<compile_context>
chip_gen: v6e
topology: v6e:2x2x1
jax: 0.10.0
libtpu: 0.0.40
codegen_flags: <defaults>
</compile_context>

<pallas_src>
import functools

import jax
import jax.numpy as jnp
from jax.experimental import pallas as pl
from jax.experimental.pallas import tpu as pltpu


# ----------------------------- fused Pallas kernel ---------------------------

def _ddqn_fused_kernel(cols1_ref, wstk_ref, wh1_ref, bias_ref, out_ref,
                       a1_scr, f2_scr, *,
                       B, H1, W1, C1, K2, S2, H2, W2, C2, C3, num_actions):
    f32 = jnp.float32
    bf16 = jnp.bfloat16

    kin1 = cols1_ref.shape[1]                # Cin * K1 * K1
    off_w2 = kin1
    off_w3 = off_w2 + K2 * K2 * C1
    off_wh2 = off_w3 + H2 * W2 * C2
    hid2 = wh1_ref.shape[1]                  # 2 * 512

    # ---- conv1: one im2col GEMM (patches built host-side) ------------------
    y1 = jnp.dot(cols1_ref[...], wstk_ref[0:off_w2, :],
                 preferred_element_type=f32)                     # (B*H1*W1, 64)
    b1 = bias_ref[0:1, :C1]
    a1_scr[...] = jnp.maximum(y1[:, :C1] + b1, 0.0)              # (B*H1*W1, C1)

    # ---- conv2: 16-tap accumulation.  Each tap gathers its rows with
    #      sublane-strided reads (channels stay on lanes 0..C1-1), assembles
    #      them along the SUBLANE axis only, and accumulates one GEMM. -------
    b2 = bias_ref[1:2, :C2]
    acc2 = jnp.zeros((B * H2 * W2, C2), f32)
    for dh in range(K2):
        for dw in range(K2):
            t = dh * K2 + dw
            w2_t = wstk_ref[off_w2 + t * C1: off_w2 + (t + 1) * C1, :]  # (C1, C2)
            pieces = [
                a1_scr[pl.ds(b * H1 * W1 + (S2 * i + dh) * W1 + dw,
                             W2, stride=S2), :]
                for b in range(B) for i in range(H2)
            ]                                                    # each (W2, C1)
            tap = jnp.concatenate(pieces, axis=0).astype(bf16)   # (B*H2*W2, C1)
            acc2 = acc2 + jnp.dot(tap, w2_t, preferred_element_type=f32)
    f2_scr[...] = jnp.maximum(acc2 + b2, 0.0)                    # (B*H2*W2, C2)

    # ---- conv3: 3x3 kernel over the whole 3x3 grid -> 9-tap accumulation ---
    b3 = bias_ref[2:3, :C3]
    npos = H2 * W2
    acc3 = jnp.zeros((B, C3), f32)
    for p in range(npos):
        w3_p = wstk_ref[off_w3 + p * C2: off_w3 + (p + 1) * C2, :]      # (C2, C3)
        rows = f2_scr[pl.ds(p, B, stride=npos), :].astype(bf16)         # (B, C2)
        acc3 = acc3 + jnp.dot(rows, w3_p, preferred_element_type=f32)
    feat = jnp.maximum(acc3 + b3, 0.0)                           # (B, C3)

    # ---- dueling heads: hidden layers fused into one GEMM, output layers
    #      fused into one block-diagonal GEMM ---------------------------------
    bh1 = bias_ref[3:4, :]
    bh2 = bias_ref[4:5, :C2]
    h = jnp.dot(feat.astype(bf16), wh1_ref[...], preferred_element_type=f32)
    h = jnp.maximum(h + bh1, 0.0)                                # (B, 2*512)
    wh2 = wstk_ref[off_wh2: off_wh2 + hid2, :]                   # (1024, 64)
    o = jnp.dot(h.astype(bf16), wh2, preferred_element_type=f32) + bh2
    adv = o[:, :num_actions]                                     # (B, A)
    val = o[:, num_actions:num_actions + 1]                      # (B, 1)

    # Dueling combine with the GLOBAL advantage mean -- exactly torch
    # `advantage.mean()` with no dim argument, as the original module does.
    out_ref[...] = val + adv - jnp.sum(adv) / adv.size


# --------------------------------- host glue ---------------------------------

def _conv_out(n, k, s):
    return (n - k) // s + 1


def pack_params(params, num_actions, dtype=jnp.bfloat16):
    """One-time packing of PyTorch-layout weights into the fused kernel's two
    weight buffers + one f32 bias slab (done at init, off the forward path)."""
    c1_w, c2_w, c3_w = params["c1_w"], params["c2_w"], params["c3_w"]
    C1 = c1_w.shape[0]                    # 32
    C2 = c2_w.shape[0]                    # 64
    C3 = c3_w.shape[0]                    # 64
    hid = params["a1_w"].shape[1]         # 512

    # conv1: (Cout, Cin, k, k) -> (Cin*k*k, Cout), zero-padded to 64 columns so
    # it shares the 64-wide weight stack (MXU cost is identical).
    w1 = c1_w.reshape(C1, -1).T
    w1 = jnp.pad(w1, ((0, 0), (0, C2 - C1)))
    # conv2/conv3: (Cout, Cin, kh, kw) -> (kh, kw, Cin, Cout) -> 2D.  Row block
    # t = kh*K + kw is the (Cin, Cout) weight of kernel tap t, matching the
    # in-kernel tap order.
    w2 = jnp.transpose(c2_w, (2, 3, 1, 0)).reshape(-1, C2)
    w3 = jnp.transpose(c3_w, (2, 3, 1, 0)).reshape(-1, C3)
    # Head output layers as one block-diagonal (2*hid, 64) matrix:
    # columns [0:A] advantage, column A value, remaining columns zero.
    wh2 = jnp.zeros((2 * hid, C2), jnp.float32)
    wh2 = wh2.at[:hid, :num_actions].set(params["a2_w"])
    wh2 = wh2.at[hid:, num_actions:num_actions + 1].set(params["v2_w"])

    w_stack = jnp.concatenate([w1, w2, w3, wh2], axis=0).astype(dtype)
    wh1 = jnp.concatenate([params["a1_w"], params["v1_w"]], axis=1).astype(dtype)

    biases = jnp.zeros((8, 2 * hid), jnp.float32)
    biases = biases.at[0, :C1].set(params["c1_b"])
    biases = biases.at[1, :C2].set(params["c2_b"])
    biases = biases.at[2, :C3].set(params["c3_b"])
    biases = biases.at[3, :].set(
        jnp.concatenate([params["a1_b"], params["v1_b"]]))
    biases = biases.at[4, :num_actions + 1].set(
        jnp.concatenate([params["a2_b"], params["v2_b"]]))
    return {"w_stack": w_stack, "wh1": wh1, "biases": biases}


@functools.partial(jax.jit, static_argnames=("num_actions",))
def ddqn_forward(x, packed, num_actions=6):
    """x: (B, C, H, W) float32 NCHW -> (B, num_actions) float32 Q-values."""
    B, C, H, W = x.shape
    K1, S1 = 8, 4
    K2, S2 = 4, 2
    K3, S3 = 3, 1
    C1, C2, C3 = 32, 64, 64
    H1, W1 = _conv_out(H, K1, S1), _conv_out(W, K1, S1)
    H2, W2 = _conv_out(H1, K2, S2), _conv_out(W1, K2, S2)
    H3, W3 = _conv_out(H2, K3, S3), _conv_out(W2, K3, S3)
    assert H3 == 1 and W3 == 1, "fused kernel assumes conv3 output is 1x1"

    wdt = packed["w_stack"].dtype
    # conv1 patch extraction via a grouped identity conv (TPU conv path; no
    # advanced-indexing gather, no 4-lane-sparse in-kernel formulation).
    patches = jax.lax.conv_general_dilated_patches(
        x.astype(jnp.float32), (K1, K1), (S1, S1), "VALID")  # (B, C*K1*K1, H1, W1)
    cols1 = jnp.transpose(patches, (0, 2, 3, 1)).reshape(B * H1 * W1,
                                                         C * K1 * K1)
    cols1 = cols1.astype(wdt)

    hid2 = packed["wh1"].shape[1]
    kernel = functools.partial(
        _ddqn_fused_kernel,
        B=B, H1=H1, W1=W1, C1=C1, K2=K2, S2=S2, H2=H2, W2=W2, C2=C2, C3=C3,
        num_actions=num_actions)

    flops = 2 * (B * H1 * W1 * (C * K1 * K1) * C2         # conv1 (padded N)
                 + B * H2 * W2 * (K2 * K2 * C1) * C2      # conv2
                 + B * (H2 * W2 * C2) * C3                # conv3
                 + B * C3 * hid2                          # head hidden
                 + B * hid2 * C2)                         # head out (padded N)
    bytes_accessed = (cols1.size * cols1.dtype.itemsize
                      + packed["w_stack"].size * packed["w_stack"].dtype.itemsize
                      + packed["wh1"].size * packed["wh1"].dtype.itemsize
                      + packed["biases"].size * 4
                      + B * num_actions * 4)

    vmem = pl.BlockSpec(memory_space=pltpu.MemorySpace.VMEM)
    # TODO(synk): for large RL batches on v7x, add a batch grid axis with
    # dimension_semantics=("parallel",) so both TensorCores share the work.
    return pl.pallas_call(
        kernel,
        out_shape=jax.ShapeDtypeStruct((B, num_actions), jnp.float32),
        in_specs=[vmem] * 4,
        out_specs=vmem,
        scratch_shapes=[
            pltpu.VMEM((B * H1 * W1, C1), jnp.float32),   # conv1 activation
            pltpu.VMEM((B * H2 * W2, C2), jnp.float32),   # conv2 activation
        ],
        cost_estimate=pl.CostEstimate(
            flops=flops, transcendentals=0, bytes_accessed=bytes_accessed),
    )(cols1, packed["w_stack"], packed["wh1"], packed["biases"])


# ------------------------------- init & reference ----------------------------

def init_params(key, input_shape, num_actions, feature_size):
    C = input_shape[0]
    ks = jax.random.split(key, 10)
    s = 0.05
    return {
        "c1_w": jax.random.normal(ks[0], (32, C, 8, 8), jnp.float32) * s,
        "c1_b": jax.random.normal(ks[1], (32,), jnp.float32) * s,
        "c2_w": jax.random.normal(ks[2], (64, 32, 4, 4), jnp.float32) * s,
        "c2_b": jax.random.normal(ks[3], (64,), jnp.float32) * s,
        "c3_w": jax.random.normal(ks[4], (64, 64, 3, 3), jnp.float32) * s,
        "c3_b": jax.random.normal(ks[5], (64,), jnp.float32) * s,
        # Linear layers stored as (in, out) = torch_weight.T
        "a1_w": jax.random.normal(ks[6], (feature_size, 512), jnp.float32) * s,
        "a1_b": jnp.zeros((512,), jnp.float32),
        "a2_w": jax.random.normal(ks[7], (512, num_actions), jnp.float32) * s,
        "a2_b": jnp.zeros((num_actions,), jnp.float32),
        "v1_w": jax.random.normal(ks[8], (feature_size, 512), jnp.float32) * s,
        "v1_b": jnp.zeros((512,), jnp.float32),
        "v2_w": jax.random.normal(ks[9], (512, 1), jnp.float32) * s,
        "v2_b": jnp.zeros((1,), jnp.float32),
    }


def ref_forward(x, params):
    """Pure-JAX f32 reference with PyTorch-layout params."""
    hp = jax.lax.Precision.HIGHEST
    dn = ("NCHW", "OIHW", "NCHW")

    def conv(h, w, b, s):
        y = jax.lax.conv_general_dilated(h, w, (s, s), "VALID",
                                         dimension_numbers=dn, precision=hp)
        return jnp.maximum(y + b[None, :, None, None], 0.0)

    def lin(v, w, b, relu):
        y = jnp.dot(v, w, precision=hp) + b
        return jnp.maximum(y, 0.0) if relu else y

    B = x.shape[0]
    h = conv(x, params["c1_w"], params["c1_b"], 4)
    h = conv(h, params["c2_w"], params["c2_b"], 2)
    h = conv(h, params["c3_w"], params["c3_b"], 1)
    feat = h.reshape(B, -1)
    adv = lin(lin(feat, params["a1_w"], params["a1_b"], True),
              params["a2_w"], params["a2_b"], False)
    val = lin(lin(feat, params["v1_w"], params["v1_b"], True),
              params["v2_w"], params["v2_b"], False)
    return val + adv - adv.mean()


# ------------------------------------ main ------------------------------------

if __name__ == "__main__":
    # input_shape = (C, H, W) = (4, 36, 36): the smallest spatial size for
    # which the 8/4 -> 4/2 -> 3/1 conv stack of the module is valid.
    # conv sizes: (36-8)//4+1 = 8 -> (8-4)//2+1 = 3 -> (3-3)//1+1 = 1
    # feature_size = 64 * 1 * 1 = 64
    input_shape = (4, 36, 36)
    num_actions = 6
    batch = 2
    feature_size = 64

    key = jax.random.PRNGKey(0)
    k_x, k_p = jax.random.split(key)
    x = jax.random.normal(k_x, (batch,) + input_shape, jnp.float32)
    params = init_params(k_p, input_shape, num_actions, feature_size)
    packed = pack_params(params, num_actions)     # one-time weight packing

    out = ddqn_forward(x, packed, num_actions=num_actions)
    out = jax.block_until_ready(out)
    assert out.shape == (batch, num_actions), out.shape

    ref = jax.block_until_ready(ref_forward(x, params))
    # bf16 MXU operands with f32 accumulation -> compare at bf16-level
    # tolerance against the f32 reference.
    err = float(jnp.max(jnp.abs(out - ref)))
    assert jnp.allclose(out, ref, rtol=2e-2, atol=2e-2), f"max abs err {err}"

    print("KERNEL_OK")
</pallas_src>

<mosaic_0001>
module attributes {stable_mosaic.version = 11 : i64} {
  func.func @_ddqn_fused_kernel(%arg0: memref<128x256xbf16, #tpu.memory_space<vmem>>, %arg1: memref<2368x64xbf16, #tpu.memory_space<vmem>>, %arg2: memref<64x1024xbf16, #tpu.memory_space<vmem>>, %arg3: memref<8x1024xf32, #tpu.memory_space<vmem>>, %arg4: memref<2x6xf32, #tpu.memory_space<vmem>>, %arg5: memref<128x32xf32, #tpu.memory_space<vmem>>, %arg6: memref<18x64xf32, #tpu.memory_space<vmem>>) attributes {dimension_semantics = [], scalar_prefetch = 0 : i64, scratch_operands = 2 : i64, tpu.core_type = #tpu.core_type<tc>} {
    %c0 = arith.constant 0 : index
    %c0_0 = arith.constant 0 : index
    %0 = vector.load %arg0[%c0, %c0_0] : memref<128x256xbf16, #tpu.memory_space<vmem>>, vector<128x256xbf16>
    %c0_1 = arith.constant 0 : index
    %c0_2 = arith.constant 0 : index
    %1 = vector.load %arg1[%c0_1, %c0_2] : memref<2368x64xbf16, #tpu.memory_space<vmem>>, vector<256x64xbf16>
    %cst = arith.constant dense<0.000000e+00> : vector<128x64xf32>
    %2 = tpu.matmul %0, %1, %cst {dimension_numbers = #tpu.dot_dimension_numbers<[1], [0], [0], [1], [0, 0, 1, 1], [], []>} : vector<128x256xbf16>, vector<256x64xbf16>, vector<128x64xf32> -> vector<128x64xf32>
    %c0_3 = arith.constant 0 : index
    %c0_4 = arith.constant 0 : index
    %3 = vector.load %arg3[%c0_3, %c0_4] : memref<8x1024xf32, #tpu.memory_space<vmem>>, vector<1x32xf32>
    %4 = vector.extract_strided_slice %2 {offsets = [0, 0], sizes = [128, 32], strides = [1, 1]} : vector<128x64xf32> to vector<128x32xf32>
    %5 = vector.broadcast %3 : vector<1x32xf32> to vector<128x32xf32>
    %6 = arith.addf %4, %5 : vector<128x32xf32>
    %cst_5 = arith.constant 0.000000e+00 : f32
    %7 = vector.broadcast %cst_5 : f32 to vector<128x32xf32>
    %8 = arith.maximumf %6, %7 : vector<128x32xf32>
    %c0_6 = arith.constant 0 : index
    %c0_7 = arith.constant 0 : index
    %9 = vector.load %arg5[%c0_6, %c0_7] : memref<128x32xf32, #tpu.memory_space<vmem>>, vector<128x32xf32>
    tpu.vector_store %arg5[%c0_6, %c0_7], %8 {strides = array<i32>} : memref<128x32xf32, #tpu.memory_space<vmem>>, vector<128x32xf32>,
    %c1 = arith.constant 1 : index
    %c0_8 = arith.constant 0 : index
    %10 = vector.load %arg3[%c1, %c0_8] : memref<8x1024xf32, #tpu.memory_space<vmem>>, vector<1x64xf32>
    %cst_9 = arith.constant 0.000000e+00 : f32
    %11 = vector.broadcast %cst_9 : f32 to vector<18x64xf32>
    %c256 = arith.constant 256 : index
    %c0_10 = arith.constant 0 : index
    %12 = vector.load %arg1[%c256, %c0_10] : memref<2368x64xbf16, #tpu.memory_space<vmem>>, vector<32x64xbf16>
    %c0_11 = arith.constant 0 : index
    %c0_12 = arith.constant 0 : index
    %13 = tpu.strided_load %arg5[%c0_11, %c0_12] {strides = array<i32: 2, 1>} : memref<128x32xf32, #tpu.memory_space<vmem>>, vector<3x32xf32>
    %c16 = arith.constant 16 : index
    %c0_13 = arith.constant 0 : index
    %14 = tpu.strided_load %arg5[%c16, %c0_13] {strides = array<i32: 2, 1>} : memref<128x32xf32, #tpu.memory_space<vmem>>, vector<3x32xf32>
    %c32 = arith.constant 32 : index
    %c0_14 = arith.constant 0 : index
    %15 = tpu.strided_load %arg5[%c32, %c0_14] {strides = array<i32: 2, 1>} : memref<128x32xf32, #tpu.memory_space<vmem>>, vector<3x32xf32>
    %c64 = arith.constant 64 : index
    %c0_15 = arith.constant 0 : index
    %16 = tpu.strided_load %arg5[%c64, %c0_15] {strides = array<i32: 2, 1>} : memref<128x32xf32, #tpu.memory_space<vmem>>, vector<3x32xf32>
    %c80 = arith.constant 80 : index
    %c0_16 = arith.constant 0 : index
    %17 = tpu.strided_load %arg5[%c80, %c0_16] {strides = array<i32: 2, 1>} : memref<128x32xf32, #tpu.memory_space<vmem>>, vector<3x32xf32>
    %c96 = arith.constant 96 : index
    %c0_17 = arith.constant 0 : index
    %18 = tpu.strided_load %arg5[%c96, %c0_17] {strides = array<i32: 2, 1>} : memref<128x32xf32, #tpu.memory_space<vmem>>, vector<3x32xf32>
    %19 = tpu.concatenate %13, %14, %15, %16, %17, %18 in 0 : vector<3x32xf32>, vector<3x32xf32>, vector<3x32xf32>, vector<3x32xf32>, vector<3x32xf32>, vector<3x32xf32> -> vector<18x32xf32>
    %20 = arith.truncf %19 : vector<18x32xf32> to vector<18x32xbf16>
    %cst_18 = arith.constant dense<0.000000e+00> : vector<18x64xf32>
    %21 = tpu.matmul %20, %12, %cst_18 {dimension_numbers = #tpu.dot_dimension_numbers<[1], [0], [0], [1], [0, 0, 1, 1], [], []>} : vector<18x32xbf16>, vector<32x64xbf16>, vector<18x64xf32> -> vector<18x64xf32>
    %22 = arith.addf %11, %21 : vector<18x64xf32>
    %c288 = arith.constant 288 : index
    %c0_19 = arith.constant 0 : index
    %23 = vector.load %arg1[%c288, %c0_19] : memref<2368x64xbf16, #tpu.memory_space<vmem>>, vector<32x64xbf16>
    %c1_20 = arith.constant 1 : index
    %c0_21 = arith.constant 0 : index
    %24 = tpu.strided_load %arg5[%c1_20, %c0_21] {strides = array<i32: 2, 1>} : memref<128x32xf32, #tpu.memory_space<vmem>>, vector<3x32xf32>
    %c17 = arith.constant 17 : index
    %c0_22 = arith.constant 0 : index
    %25 = tpu.strided_load %arg5[%c17, %c0_22] {strides = array<i32: 2, 1>} : memref<128x32xf32, #tpu.memory_space<vmem>>, vector<3x32xf32>
    %c33 = arith.constant 33 : index
    %c0_23 = arith.constant 0 : index
    %26 = tpu.strided_load %arg5[%c33, %c0_23] {strides = array<i32: 2, 1>} : memref<128x32xf32, #tpu.memory_space<vmem>>, vector<3x32xf32>
    %c65 = arith.constant 65 : index
    %c0_24 = arith.constant 0 : index
    %27 = tpu.strided_load %arg5[%c65, %c0_24] {strides = array<i32: 2, 1>} : memref<128x32xf32, #tpu.memory_space<vmem>>, vector<3x32xf32>
    %c81 = arith.constant 81 : index
    %c0_25 = arith.constant 0 : index
    %28 = tpu.strided_load %arg5[%c81, %c0_25] {strides = array<i32: 2, 1>} : memref<128x32xf32, #tpu.memory_space<vmem>>, vector<3x32xf32>
    %c97 = arith.constant 97 : index
    %c0_26 = arith.constant 0 : index
    %29 = tpu.strided_load %arg5[%c97, %c0_26] {strides = array<i32: 2, 1>} : memref<128x32xf32, #tpu.memory_space<vmem>>, vector<3x32xf32>
    %30 = tpu.concatenate %24, %25, %26, %27, %28, %29 in 0 : vector<3x32xf32>, vector<3x32xf32>, vector<3x32xf32>, vector<3x32xf32>, vector<3x32xf32>, vector<3x32xf32> -> vector<18x32xf32>
    %31 = arith.truncf %30 : vector<18x32xf32> to vector<18x32xbf16>
    %cst_27 = arith.constant dense<0.000000e+00> : vector<18x64xf32>
    %32 = tpu.matmul %31, %23, %cst_27 {dimension_numbers = #tpu.dot_dimension_numbers<[1], [0], [0], [1], [0, 0, 1, 1], [], []>} : vector<18x32xbf16>, vector<32x64xbf16>, vector<18x64xf32> -> vector<18x64xf32>
    %33 = arith.addf %22, %32 : vector<18x64xf32>
    %c320 = arith.constant 320 : index
    %c0_28 = arith.constant 0 : index
    %34 = vector.load %arg1[%c320, %c0_28] : memref<2368x64xbf16, #tpu.memory_space<vmem>>, vector<32x64xbf16>
    %c2 = arith.constant 2 : index
    %c0_29 = arith.constant 0 : index
    %35 = tpu.strided_load %arg5[%c2, %c0_29] {strides = array<i32: 2, 1>} : memref<128x32xf32, #tpu.memory_space<vmem>>, vector<3x32xf32>
    %c18 = arith.constant 18 : index
    %c0_30 = arith.constant 0 : index
    %36 = tpu.strided_load %arg5[%c18, %c0_30] {strides = array<i32: 2, 1>} : memref<128x32xf32, #tpu.memory_space<vmem>>, vector<3x32xf32>
    %c34 = arith.constant 34 : index
    %c0_31 = arith.constant 0 : index
    %37 = tpu.strided_load %arg5[%c34, %c0_31] {strides = array<i32: 2, 1>} : memref<128x32xf32, #tpu.memory_space<vmem>>, vector<3x32xf32>
    %c66 = arith.constant 66 : index
    %c0_32 = arith.constant 0 : index
    %38 = tpu.strided_load %arg5[%c66, %c0_32] {strides = array<i32: 2, 1>} : memref<128x32xf32, #tpu.memory_space<vmem>>, vector<3x32xf32>
    %c82 = arith.constant 82 : index
    %c0_33 = arith.constant 0 : index
    %39 = tpu.strided_load %arg5[%c82, %c0_33] {strides = array<i32: 2, 1>} : memref<128x32xf32, #tpu.memory_space<vmem>>, vector<3x32xf32>
    %c98 = arith.constant 98 : index
    %c0_34 = arith.constant 0 : index
    %40 = tpu.strided_load %arg5[%c98, %c0_34] {strides = array<i32: 2, 1>} : memref<128x32xf32, #tpu.memory_space<vmem>>, vector<3x32xf32>
    %41 = tpu.concatenate %35, %36, %37, %38, %39, %40 in 0 : vector<3x32xf32>, vector<3x32xf32>, vector<3x32xf32>, vector<3x32xf32>, vector<3x32xf32>, vector<3x32xf32> -> vector<18x32xf32>
    %42 = arith.truncf %41 : vector<18x32xf32> to vector<18x32xbf16>
    %cst_35 = arith.constant dense<0.000000e+00> : vector<18x64xf32>
    %43 = tpu.matmul %42, %34, %cst_35 {dimension_numbers = #tpu.dot_dimension_numbers<[1], [0], [0], [1], [0, 0, 1, 1], [], []>} : vector<18x32xbf16>, vector<32x64xbf16>, vector<18x64xf32> -> vector<18x64xf32>
    %44 = arith.addf %33, %43 : vector<18x64xf32>
    %c352 = arith.constant 352 : index
    %c0_36 = arith.constant 0 : index
    %45 = vector.load %arg1[%c352, %c0_36] : memref<2368x64xbf16, #tpu.memory_space<vmem>>, vector<32x64xbf16>
    %c3 = arith.constant 3 : index
    %c0_37 = arith.constant 0 : index
    %46 = tpu.strided_load %arg5[%c3, %c0_37] {strides = array<i32: 2, 1>} : memref<128x32xf32, #tpu.memory_space<vmem>>, vector<3x32xf32>
    %c19 = arith.constant 19 : index
    %c0_38 = arith.constant 0 : index
    %47 = tpu.strided_load %arg5[%c19, %c0_38] {strides = array<i32: 2, 1>} : memref<128x32xf32, #tpu.memory_space<vmem>>, vector<3x32xf32>
    %c35 = arith.constant 35 : index
    %c0_39 = arith.constant 0 : index
    %48 = tpu.strided_load %arg5[%c35, %c0_39] {strides = array<i32: 2, 1>} : memref<128x32xf32, #tpu.memory_space<vmem>>, vector<3x32xf32>
    %c67 = arith.constant 67 : index
    %c0_40 = arith.constant 0 : index
    %49 = tpu.strided_load %arg5[%c67, %c0_40] {strides = array<i32: 2, 1>} : memref<128x32xf32, #tpu.memory_space<vmem>>, vector<3x32xf32>
    %c83 = arith.constant 83 : index
    %c0_41 = arith.constant 0 : index
    %50 = tpu.strided_load %arg5[%c83, %c0_41] {strides = array<i32: 2, 1>} : memref<128x32xf32, #tpu.memory_space<vmem>>, vector<3x32xf32>
    %c99 = arith.constant 99 : index
    %c0_42 = arith.constant 0 : index
    %51 = tpu.strided_load %arg5[%c99, %c0_42] {strides = array<i32: 2, 1>} : memref<128x32xf32, #tpu.memory_space<vmem>>, vector<3x32xf32>
    %52 = tpu.concatenate %46, %47, %48, %49, %50, %51 in 0 : vector<3x32xf32>, vector<3x32xf32>, vector<3x32xf32>, vector<3x32xf32>, vector<3x32xf32>, vector<3x32xf32> -> vector<18x32xf32>
    %53 = arith.truncf %52 : vector<18x32xf32> to vector<18x32xbf16>
    %cst_43 = arith.constant dense<0.000000e+00> : vector<18x64xf32>
    %54 = tpu.matmul %53, %45, %cst_43 {dimension_numbers = #tpu.dot_dimension_numbers<[1], [0], [0], [1], [0, 0, 1, 1], [], []>} : vector<18x32xbf16>, vector<32x64xbf16>, vector<18x64xf32> -> vector<18x64xf32>
    %55 = arith.addf %44, %54 : vector<18x64xf32>
    %c384 = arith.constant 384 : index
    %c0_44 = arith.constant 0 : index
    %56 = vector.load %arg1[%c384, %c0_44] : memref<2368x64xbf16, #tpu.memory_space<vmem>>, vector<32x64xbf16>
    %c8 = arith.constant 8 : index
    %c0_45 = arith.constant 0 : index
    %57 = tpu.strided_load %arg5[%c8, %c0_45] {strides = array<i32: 2, 1>} : memref<128x32xf32, #tpu.memory_space<vmem>>, vector<3x32xf32>
    %c24 = arith.constant 24 : index
    %c0_46 = arith.constant 0 : index
    %58 = tpu.strided_load %arg5[%c24, %c0_46] {strides = array<i32: 2, 1>} : memref<128x32xf32, #tpu.memory_space<vmem>>, vector<3x32xf32>
    %c40 = arith.constant 40 : index
    %c0_47 = arith.constant 0 : index
    %59 = tpu.strided_load %arg5[%c40, %c0_47] {strides = array<i32: 2, 1>} : memref<128x32xf32, #tpu.memory_space<vmem>>, vector<3x32xf32>
    %c72 = arith.constant 72 : index
    %c0_48 = arith.constant 0 : index
    %60 = tpu.strided_load %arg5[%c72, %c0_48] {strides = array<i32: 2, 1>} : memref<128x32xf32, #tpu.memory_space<vmem>>, vector<3x32xf32>
    %c88 = arith.constant 88 : index
    %c0_49 = arith.constant 0 : index
    %61 = tpu.strided_load %arg5[%c88, %c0_49] {strides = array<i32: 2, 1>} : memref<128x32xf32, #tpu.memory_space<vmem>>, vector<3x32xf32>
    %c104 = arith.constant 104 : index
    %c0_50 = arith.constant 0 : index
    %62 = tpu.strided_load %arg5[%c104, %c0_50] {strides = array<i32: 2, 1>} : memref<128x32xf32, #tpu.memory_space<vmem>>, vector<3x32xf32>
    %63 = tpu.concatenate %57, %58, %59, %60, %61, %62 in 0 : vector<3x32xf32>, vector<3x32xf32>, vector<3x32xf32>, vector<3x32xf32>, vector<3x32xf32>, vector<3x32xf32> -> vector<18x32xf32>
    %64 = arith.truncf %63 : vector<18x32xf32> to vector<18x32xbf16>
    %cst_51 = arith.constant dense<0.000000e+00> : vector<18x64xf32>
    %65 = tpu.matmul %64, %56, %cst_51 {dimension_numbers = #tpu.dot_dimension_numbers<[1], [0], [0], [1], [0, 0, 1, 1], [], []>} : vector<18x32xbf16>, vector<32x64xbf16>, vector<18x64xf32> -> vector<18x64xf32>
    %66 = arith.addf %55, %65 : vector<18x64xf32>
    %c416 = arith.constant 416 : index
    %c0_52 = arith.constant 0 : index
    %67 = vector.load %arg1[%c416, %c0_52] : memref<2368x64xbf16, #tpu.memory_space<vmem>>, vector<32x64xbf16>
    %c9 = arith.constant 9 : index
    %c0_53 = arith.constant 0 : index
    %68 = tpu.strided_load %arg5[%c9, %c0_53] {strides = array<i32: 2, 1>} : memref<128x32xf32, #tpu.memory_space<vmem>>, vector<3x32xf32>
    %c25 = arith.constant 25 : index
    %c0_54 = arith.constant 0 : index
    %69 = tpu.strided_load %arg5[%c25, %c0_54] {strides = array<i32: 2, 1>} : memref<128x32xf32, #tpu.memory_space<vmem>>, vector<3x32xf32>
    %c41 = arith.constant 41 : index
    %c0_55 = arith.constant 0 : index
    %70 = tpu.strided_load %arg5[%c41, %c0_55] {strides = array<i32: 2, 1>} : memref<128x32xf32, #tpu.memory_space<vmem>>, vector<3x32xf32>
    %c73 = arith.constant 73 : index
    %c0_56 = arith.constant 0 : index
    %71 = tpu.strided_load %arg5[%c73, %c0_56] {strides = array<i32: 2, 1>} : memref<128x32xf32, #tpu.memory_space<vmem>>, vector<3x32xf32>
    %c89 = arith.constant 89 : index
    %c0_57 = arith.constant 0 : index
    %72 = tpu.strided_load %arg5[%c89, %c0_57] {strides = array<i32: 2, 1>} : memref<128x32xf32, #tpu.memory_space<vmem>>, vector<3x32xf32>
    %c105 = arith.constant 105 : index
    %c0_58 = arith.constant 0 : index
    %73 = tpu.strided_load %arg5[%c105, %c0_58] {strides = array<i32: 2, 1>} : memref<128x32xf32, #tpu.memory_space<vmem>>, vector<3x32xf32>
    %74 = tpu.concatenate %68, %69, %70, %71, %72, %73 in 0 : vector<3x32xf32>, vector<3x32xf32>, vector<3x32xf32>, vector<3x32xf32>, vector<3x32xf32>, vector<3x32xf32> -> vector<18x32xf32>
    %75 = arith.truncf %74 : vector<18x32xf32> to vector<18x32xbf16>
    %cst_59 = arith.constant dense<0.000000e+00> : vector<18x64xf32>
    %76 = tpu.matmul %75, %67, %cst_59 {dimension_numbers = #tpu.dot_dimension_numbers<[1], [0], [0], [1], [0, 0, 1, 1], [], []>} : vector<18x32xbf16>, vector<32x64xbf16>, vector<18x64xf32> -> vector<18x64xf32>
    %77 = arith.addf %66, %76 : vector<18x64xf32>
    %c448 = arith.constant 448 : index
    %c0_60 = arith.constant 0 : index
    %78 = vector.load %arg1[%c448, %c0_60] : memref<2368x64xbf16, #tpu.memory_space<vmem>>, vector<32x64xbf16>
    %c10 = arith.constant 10 : index
    %c0_61 = arith.constant 0 : index
    %79 = tpu.strided_load %arg5[%c10, %c0_61] {strides = array<i32: 2, 1>} : memref<128x32xf32, #tpu.memory_space<vmem>>, vector<3x32xf32>
    %c26 = arith.constant 26 : index
    %c0_62 = arith.constant 0 : index
    %80 = tpu.strided_load %arg5[%c26, %c0_62] {strides = array<i32: 2, 1>} : memref<128x32xf32, #tpu.memory_space<vmem>>, vector<3x32xf32>
    %c42 = arith.constant 42 : index
    %c0_63 = arith.constant 0 : index
    %81 = tpu.strided_load %arg5[%c42, %c0_63] {strides = array<i32: 2, 1>} : memref<128x32xf32, #tpu.memory_space<vmem>>, vector<3x32xf32>
    %c74 = arith.constant 74 : index
    %c0_64 = arith.constant 0 : index
    %82 = tpu.strided_load %arg5[%c74, %c0_64] {strides = array<i32: 2, 1>} : memref<128x32xf32, #tpu.memory_space<vmem>>, vector<3x32xf32>
    %c90 = arith.constant 90 : index
    %c0_65 = arith.constant 0 : index
    %83 = tpu.strided_load %arg5[%c90, %c0_65] {strides = array<i32: 2, 1>} : memref<128x32xf32, #tpu.memory_space<vmem>>, vector<3x32xf32>
    %c106 = arith.constant 106 : index
    %c0_66 = arith.constant 0 : index
    %84 = tpu.strided_load %arg5[%c106, %c0_66] {strides = array<i32: 2, 1>} : memref<128x32xf32, #tpu.memory_space<vmem>>, vector<3x32xf32>
    %85 = tpu.concatenate %79, %80, %81, %82, %83, %84 in 0 : vector<3x32xf32>, vector<3x32xf32>, vector<3x32xf32>, vector<3x32xf32>, vector<3x32xf32>, vector<3x32xf32> -> vector<18x32xf32>
    %86 = arith.truncf %85 : vector<18x32xf32> to vector<18x32xbf16>
    %cst_67 = arith.constant dense<0.000000e+00> : vector<18x64xf32>
    %87 = tpu.matmul %86, %78, %cst_67 {dimension_numbers = #tpu.dot_dimension_numbers<[1], [0], [0], [1], [0, 0, 1, 1], [], []>} : vector<18x32xbf16>, vector<32x64xbf16>, vector<18x64xf32> -> vector<18x64xf32>
    %88 = arith.addf %77, %87 : vector<18x64xf32>
    %c480 = arith.constant 480 : index
    %c0_68 = arith.constant 0 : index
    %89 = vector.load %arg1[%c480, %c0_68] : memref<2368x64xbf16, #tpu.memory_space<vmem>>, vector<32x64xbf16>
    %c11 = arith.constant 11 : index
    %c0_69 = arith.constant 0 : index
    %90 = tpu.strided_load %arg5[%c11, %c0_69] {strides = array<i32: 2, 1>} : memref<128x32xf32, #tpu.memory_space<vmem>>, vector<3x32xf32>
    %c27 = arith.constant 27 : index
    %c0_70 = arith.constant 0 : index
    %91 = tpu.strided_load %arg5[%c27, %c0_70] {strides = array<i32: 2, 1>} : memref<128x32xf32, #tpu.memory_space<vmem>>, vector<3x32xf32>
    %c43 = arith.constant 43 : index
    %c0_71 = arith.constant 0 : index
    %92 = tpu.strided_load %arg5[%c43, %c0_71] {strides = array<i32: 2, 1>} : memref<128x32xf32, #tpu.memory_space<vmem>>, vector<3x32xf32>
    %c75 = arith.constant 75 : index
    %c0_72 = arith.constant 0 : index
    %93 = tpu.strided_load %arg5[%c75, %c0_72] {strides = array<i32: 2, 1>} : memref<128x32xf32, #tpu.memory_space<vmem>>, vector<3x32xf32>
    %c91 = arith.constant 91 : index
    %c0_73 = arith.constant 0 : index
    %94 = tpu.strided_load %arg5[%c91, %c0_73] {strides = array<i32: 2, 1>} : memref<128x32xf32, #tpu.memory_space<vmem>>, vector<3x32xf32>
    %c107 = arith.constant 107 : index
    %c0_74 = arith.constant 0 : index
    %95 = tpu.strided_load %arg5[%c107, %c0_74] {strides = array<i32: 2, 1>} : memref<128x32xf32, #tpu.memory_space<vmem>>, vector<3x32xf32>
    %96 = tpu.concatenate %90, %91, %92, %93, %94, %95 in 0 : vector<3x32xf32>, vector<3x32xf32>, vector<3x32xf32>, vector<3x32xf32>, vector<3x32xf32>, vector<3x32xf32> -> vector<18x32xf32>
    %97 = arith.truncf %96 : vector<18x32xf32> to vector<18x32xbf16>
    %cst_75 = arith.constant dense<0.000000e+00> : vector<18x64xf32>
    %98 = tpu.matmul %97, %89, %cst_75 {dimension_numbers = #tpu.dot_dimension_numbers<[1], [0], [0], [1], [0, 0, 1, 1], [], []>} : vector<18x32xbf16>, vector<32x64xbf16>, vector<18x64xf32> -> vector<18x64xf32>
    %99 = arith.addf %88, %98 : vector<18x64xf32>
    %c512 = arith.constant 512 : index
    %c0_76 = arith.constant 0 : index
    %100 = vector.load %arg1[%c512, %c0_76] : memref<2368x64xbf16, #tpu.memory_space<vmem>>, vector<32x64xbf16>
    %c16_77 = arith.constant 16 : index
    %c0_78 = arith.constant 0 : index
    %101 = tpu.strided_load %arg5[%c16_77, %c0_78] {strides = array<i32: 2, 1>} : memref<128x32xf32, #tpu.memory_space<vmem>>, vector<3x32xf32>
    %c32_79 = arith.constant 32 : index
    %c0_80 = arith.constant 0 : index
    %102 = tpu.strided_load %arg5[%c32_79, %c0_80] {strides = array<i32: 2, 1>} : memref<128x32xf32, #tpu.memory_space<vmem>>, vector<3x32xf32>
    %c48 = arith.constant 48 : index
    %c0_81 = arith.constant 0 : index
    %103 = tpu.strided_load %arg5[%c48, %c0_81] {strides = array<i32: 2, 1>} : memref<128x32xf32, #tpu.memory_space<vmem>>, vector<3x32xf32>
    %c80_82 = arith.constant 80 : index
    %c0_83 = arith.constant 0 : index
    %104 = tpu.strided_load %arg5[%c80_82, %c0_83] {strides = array<i32: 2, 1>} : memref<128x32xf32, #tpu.memory_space<vmem>>, vector<3x32xf32>
    %c96_84 = arith.constant 96 : index
    %c0_85 = arith.constant 0 : index
    %105 = tpu.strided_load %arg5[%c96_84, %c0_85] {strides = array<i32: 2, 1>} : memref<128x32xf32, #tpu.memory_space<vmem>>, vector<3x32xf32>
    %c112 = arith.constant 112 : index
    %c0_86 = arith.constant 0 : index
    %106 = tpu.strided_load %arg5[%c112, %c0_86] {strides = array<i32: 2, 1>} : memref<128x32xf32, #tpu.memory_space<vmem>>, vector<3x32xf32>
    %107 = tpu.concatenate %101, %102, %103, %104, %105, %106 in 0 : vector<3x32xf32>, vector<3x32xf32>, vector<3x32xf32>, vector<3x32xf32>, vector<3x32xf32>, vector<3x32xf32> -> vector<18x32xf32>
    %108 = arith.truncf %107 : vector<18x32xf32> to vector<18x32xbf16>
    %cst_87 = arith.constant dense<0.000000e+00> : vector<18x64xf32>
    %109 = tpu.matmul %108, %100, %cst_87 {dimension_numbers = #tpu.dot_dimension_numbers<[1], [0], [0], [1], [0, 0, 1, 1], [], []>} : vector<18x32xbf16>, vector<32x64xbf16>, vector<18x64xf32> -> vector<18x64xf32>
    %110 = arith.addf %99, %109 : vector<18x64xf32>
    %c544 = arith.constant 544 : index
    %c0_88 = arith.constant 0 : index
    %111 = vector.load %arg1[%c544, %c0_88] : memref<2368x64xbf16, #tpu.memory_space<vmem>>, vector<32x64xbf16>
    %c17_89 = arith.constant 17 : index
    %c0_90 = arith.constant 0 : index
    %112 = tpu.strided_load %arg5[%c17_89, %c0_90] {strides = array<i32: 2, 1>} : memref<128x32xf32, #tpu.memory_space<vmem>>, vector<3x32xf32>
    %c33_91 = arith.constant 33 : index
    %c0_92 = arith.constant 0 : index
    %113 = tpu.strided_load %arg5[%c33_91, %c0_92] {strides = array<i32: 2, 1>} : memref<128x32xf32, #tpu.memory_space<vmem>>, vector<3x32xf32>
    %c49 = arith.constant 49 : index
    %c0_93 = arith.constant 0 : index
    %114 = tpu.strided_load %arg5[%c49, %c0_93] {strides = array<i32: 2, 1>} : memref<128x32xf32, #tpu.memory_space<vmem>>, vector<3x32xf32>
    %c81_94 = arith.constant 81 : index
    %c0_95 = arith.constant 0 : index
    %115 = tpu.strided_load %arg5[%c81_94, %c0_95] {strides = array<i32: 2, 1>} : memref<128x32xf32, #tpu.memory_space<vmem>>, vector<3x32xf32>
    %c97_96 = arith.constant 97 : index
    %c0_97 = arith.constant 0 : index
    %116 = tpu.strided_load %arg5[%c97_96, %c0_97] {strides = array<i32: 2, 1>} : memref<128x32xf32, #tpu.memory_space<vmem>>, vector<3x32xf32>
    %c113 = arith.constant 113 : index
    %c0_98 = arith.constant 0 : index
    %117 = tpu.strided_load %arg5[%c113, %c0_98] {strides = array<i32: 2, 1>} : memref<128x32xf32, #tpu.memory_space<vmem>>, vector<3x32xf32>
    %118 = tpu.concatenate %112, %113, %114, %115, %116, %117 in 0 : vector<3x32xf32>, vector<3x32xf32>, vector<3x32xf32>, vector<3x32xf32>, vector<3x32xf32>, vector<3x32xf32> -> vector<18x32xf32>
    %119 = arith.truncf %118 : vector<18x32xf32> to vector<18x32xbf16>
    %cst_99 = arith.constant dense<0.000000e+00> : vector<18x64xf32>
    %120 = tpu.matmul %119, %111, %cst_99 {dimension_numbers = #tpu.dot_dimension_numbers<[1], [0], [0], [1], [0, 0, 1, 1], [], []>} : vector<18x32xbf16>, vector<32x64xbf16>, vector<18x64xf32> -> vector<18x64xf32>
    %121 = arith.addf %110, %120 : vector<18x64xf32>
    %c576 = arith.constant 576 : index
    %c0_100 = arith.constant 0 : index
    %122 = vector.load %arg1[%c576, %c0_100] : memref<2368x64xbf16, #tpu.memory_space<vmem>>, vector<32x64xbf16>
    %c18_101 = arith.constant 18 : index
    %c0_102 = arith.constant 0 : index
    %123 = tpu.strided_load %arg5[%c18_101, %c0_102] {strides = array<i32: 2, 1>} : memref<128x32xf32, #tpu.memory_space<vmem>>, vector<3x32xf32>
    %c34_103 = arith.constant 34 : index
    %c0_104 = arith.constant 0 : index
    %124 = tpu.strided_load %arg5[%c34_103, %c0_104] {strides = array<i32: 2, 1>} : memref<128x32xf32, #tpu.memory_space<vmem>>, vector<3x32xf32>
    %c50 = arith.constant 50 : index
    %c0_105 = arith.constant 0 : index
    %125 = tpu.strided_load %arg5[%c50, %c0_105] {strides = array<i32: 2, 1>} : memref<128x32xf32, #tpu.memory_space<vmem>>, vector<3x32xf32>
    %c82_106 = arith.constant 82 : index
    %c0_107 = arith.constant 0 : index
    %126 = tpu.strided_load %arg5[%c82_106, %c0_107] {strides = array<i32: 2, 1>} : memref<128x32xf32, #tpu.memory_space<vmem>>, vector<3x32xf32>
    %c98_108 = arith.constant 98 : index
    %c0_109 = arith.constant 0 : index
    %127 = tpu.strided_load %arg5[%c98_108, %c0_109] {strides = array<i32: 2, 1>} : memref<128x32xf32, #tpu.memory_space<vmem>>, vector<3x32xf32>
    %c114 = arith.constant 114 : index
    %c0_110 = arith.constant 0 : index
    %128 = tpu.strided_load %arg5[%c114, %c0_110] {strides = array<i32: 2, 1>} : memref<128x32xf32, #tpu.memory_space<vmem>>, vector<3x32xf32>
    %129 = tpu.concatenate %123, %124, %125, %126, %127, %128 in 0 : vector<3x32xf32>, vector<3x32xf32>, vector<3x32xf32>, vector<3x32xf32>, vector<3x32xf32>, vector<3x32xf32> -> vector<18x32xf32>
    %130 = arith.truncf %129 : vector<18x32xf32> to vector<18x32xbf16>
    %cst_111 = arith.constant dense<0.000000e+00> : vector<18x64xf32>
    %131 = tpu.matmul %130, %122, %cst_111 {dimension_numbers = #tpu.dot_dimension_numbers<[1], [0], [0], [1], [0, 0, 1, 1], [], []>} : vector<18x32xbf16>, vector<32x64xbf16>, vector<18x64xf32> -> vector<18x64xf32>
    %132 = arith.addf %121, %131 : vector<18x64xf32>
    %c608 = arith.constant 608 : index
    %c0_112 = arith.constant 0 : index
    %133 = vector.load %arg1[%c608, %c0_112] : memref<2368x64xbf16, #tpu.memory_space<vmem>>, vector<32x64xbf16>
    %c19_113 = arith.constant 19 : index
    %c0_114 = arith.constant 0 : index
    %134 = tpu.strided_load %arg5[%c19_113, %c0_114] {strides = array<i32: 2, 1>} : memref<128x32xf32, #tpu.memory_space<vmem>>, vector<3x32xf32>
    %c35_115 = arith.constant 35 : index
    %c0_116 = arith.constant 0 : index
    %135 = tpu.strided_load %arg5[%c35_115, %c0_116] {strides = array<i32: 2, 1>} : memref<128x32xf32, #tpu.memory_space<vmem>>, vector<3x32xf32>
    %c51 = arith.constant 51 : index
    %c0_117 = arith.constant 0 : index
    %136 = tpu.strided_load %arg5[%c51, %c0_117] {strides = array<i32: 2, 1>} : memref<128x32xf32, #tpu.memory_space<vmem>>, vector<3x32xf32>
    %c83_118 = arith.constant 83 : index
    %c0_119 = arith.constant 0 : index
    %137 = tpu.strided_load %arg5[%c83_118, %c0_119] {strides = array<i32: 2, 1>} : memref<128x32xf32, #tpu.memory_space<vmem>>, vector<3x32xf32>
    %c99_120 = arith.constant 99 : index
    %c0_121 = arith.constant 0 : index
    %138 = tpu.strided_load %arg5[%c99_120, %c0_121] {strides = array<i32: 2, 1>} : memref<128x32xf32, #tpu.memory_space<vmem>>, vector<3x32xf32>
    %c115 = arith.constant 115 : index
    %c0_122 = arith.constant 0 : index
    %139 = tpu.strided_load %arg5[%c115, %c0_122] {strides = array<i32: 2, 1>} : memref<128x32xf32, #tpu.memory_space<vmem>>, vector<3x32xf32>
    %140 = tpu.concatenate %134, %135, %136, %137, %138, %139 in 0 : vector<3x32xf32>, vector<3x32xf32>, vector<3x32xf32>, vector<3x32xf32>, vector<3x32xf32>, vector<3x32xf32> -> vector<18x32xf32>
    %141 = arith.truncf %140 : vector<18x32xf32> to vector<18x32xbf16>
    %cst_123 = arith.constant dense<0.000000e+00> : vector<18x64xf32>
    %142 = tpu.matmul %141, %133, %cst_123 {dimension_numbers = #tpu.dot_dimension_numbers<[1], [0], [0], [1], [0, 0, 1, 1], [], []>} : vector<18x32xbf16>, vector<32x64xbf16>, vector<18x64xf32> -> vector<18x64xf32>
    %143 = arith.addf %132, %142 : vector<18x64xf32>
    %c640 = arith.constant 640 : index
    %c0_124 = arith.constant 0 : index
    %144 = vector.load %arg1[%c640, %c0_124] : memref<2368x64xbf16, #tpu.memory_space<vmem>>, vector<32x64xbf16>
    %c24_125 = arith.constant 24 : index
    %c0_126 = arith.constant 0 : index
    %145 = tpu.strided_load %arg5[%c24_125, %c0_126] {strides = array<i32: 2, 1>} : memref<128x32xf32, #tpu.memory_space<vmem>>, vector<3x32xf32>
    %c40_127 = arith.constant 40 : index
    %c0_128 = arith.constant 0 : index
    %146 = tpu.strided_load %arg5[%c40_127, %c0_128] {strides = array<i32: 2, 1>} : memref<128x32xf32, #tpu.memory_space<vmem>>, vector<3x32xf32>
    %c56 = arith.constant 56 : index
    %c0_129 = arith.constant 0 : index
    %147 = tpu.strided_load %arg5[%c56, %c0_129] {strides = array<i32: 2, 1>} : memref<128x32xf32, #tpu.memory_space<vmem>>, vector<3x32xf32>
    %c88_130 = arith.constant 88 : index
    %c0_131 = arith.constant 0 : index
    %148 = tpu.strided_load %arg5[%c88_130, %c0_131] {strides = array<i32: 2, 1>} : memref<128x32xf32, #tpu.memory_space<vmem>>, vector<3x32xf32>
    %c104_132 = arith.constant 104 : index
    %c0_133 = arith.constant 0 : index
    %149 = tpu.strided_load %arg5[%c104_132, %c0_133] {strides = array<i32: 2, 1>} : memref<128x32xf32, #tpu.memory_space<vmem>>, vector<3x32xf32>
    %c120 = arith.constant 120 : index
    %c0_134 = arith.constant 0 : index
    %150 = tpu.strided_load %arg5[%c120, %c0_134] {strides = array<i32: 2, 1>} : memref<128x32xf32, #tpu.memory_space<vmem>>, vector<3x32xf32>
    %151 = tpu.concatenate %145, %146, %147, %148, %149, %150 in 0 : vector<3x32xf32>, vector<3x32xf32>, vector<3x32xf32>, vector<3x32xf32>, vector<3x32xf32>, vector<3x32xf32> -> vector<18x32xf32>
    %152 = arith.truncf %151 : vector<18x32xf32> to vector<18x32xbf16>
    %cst_135 = arith.constant dense<0.000000e+00> : vector<18x64xf32>
    %153 = tpu.matmul %152, %144, %cst_135 {dimension_numbers = #tpu.dot_dimension_numbers<[1], [0], [0], [1], [0, 0, 1, 1], [], []>} : vector<18x32xbf16>, vector<32x64xbf16>, vector<18x64xf32> -> vector<18x64xf32>
    %154 = arith.addf %143, %153 : vector<18x64xf32>
    %c672 = arith.constant 672 : index
    %c0_136 = arith.constant 0 : index
    %155 = vector.load %arg1[%c672, %c0_136] : memref<2368x64xbf16, #tpu.memory_space<vmem>>, vector<32x64xbf16>
    %c25_137 = arith.constant 25 : index
    %c0_138 = arith.constant 0 : index
    %156 = tpu.strided_load %arg5[%c25_137, %c0_138] {strides = array<i32: 2, 1>} : memref<128x32xf32, #tpu.memory_space<vmem>>, vector<3x32xf32>
    %c41_139 = arith.constant 41 : index
    %c0_140 = arith.constant 0 : index
    %157 = tpu.strided_load %arg5[%c41_139, %c0_140] {strides = array<i32: 2, 1>} : memref<128x32xf32, #tpu.memory_space<vmem>>, vector<3x32xf32>
    %c57 = arith.constant 57 : index
    %c0_141 = arith.constant 0 : index
    %158 = tpu.strided_load %arg5[%c57, %c0_141] {strides = array<i32: 2, 1>} : memref<128x32xf32, #tpu.memory_space<vmem>>, vector<3x32xf32>
    %c89_142 = arith.constant 89 : index
    %c0_143 = arith.constant 0 : index
    %159 = tpu.strided_load %arg5[%c89_142, %c0_143] {strides = array<i32: 2, 1>} : memref<128x32xf32, #tpu.memory_space<vmem>>, vector<3x32xf32>
    %c105_144 = arith.constant 105 : index
    %c0_145 = arith.constant 0 : index
    %160 = tpu.strided_load %arg5[%c105_144, %c0_145] {strides = array<i32: 2, 1>} : memref<128x32xf32, #tpu.memory_space<vmem>>, vector<3x32xf32>
    %c121 = arith.constant 121 : index
    %c0_146 = arith.constant 0 : index
    %161 = tpu.strided_load %arg5[%c121, %c0_146] {strides = array<i32: 2, 1>} : memref<128x32xf32, #tpu.memory_space<vmem>>, vector<3x32xf32>
    %162 = tpu.concatenate %156, %157, %158, %159, %160, %161 in 0 : vector<3x32xf32>, vector<3x32xf32>, vector<3x32xf32>, vector<3x32xf32>, vector<3x32xf32>, vector<3x32xf32> -> vector<18x32xf32>
    %163 = arith.truncf %162 : vector<18x32xf32> to vector<18x32xbf16>
    %cst_147 = arith.constant dense<0.000000e+00> : vector<18x64xf32>
    %164 = tpu.matmul %163, %155, %cst_147 {dimension_numbers = #tpu.dot_dimension_numbers<[1], [0], [0], [1], [0, 0, 1, 1], [], []>} : vector<18x32xbf16>, vector<32x64xbf16>, vector<18x64xf32> -> vector<18x64xf32>
    %165 = arith.addf %154, %164 : vector<18x64xf32>
    %c704 = arith.constant 704 : index
    %c0_148 = arith.constant 0 : index
    %166 = vector.load %arg1[%c704, %c0_148] : memref<2368x64xbf16, #tpu.memory_space<vmem>>, vector<32x64xbf16>
    %c26_149 = arith.constant 26 : index
    %c0_150 = arith.constant 0 : index
    %167 = tpu.strided_load %arg5[%c26_149, %c0_150] {strides = array<i32: 2, 1>} : memref<128x32xf32, #tpu.memory_space<vmem>>, vector<3x32xf32>
    %c42_151 = arith.constant 42 : index
    %c0_152 = arith.constant 0 : index
    %168 = tpu.strided_load %arg5[%c42_151, %c0_152] {strides = array<i32: 2, 1>} : memref<128x32xf32, #tpu.memory_space<vmem>>, vector<3x32xf32>
    %c58 = arith.constant 58 : index
    %c0_153 = arith.constant 0 : index
    %169 = tpu.strided_load %arg5[%c58, %c0_153] {strides = array<i32: 2, 1>} : memref<128x32xf32, #tpu.memory_space<vmem>>, vector<3x32xf32>
    %c90_154 = arith.constant 90 : index
    %c0_155 = arith.constant 0 : index
    %170 = tpu.strided_load %arg5[%c90_154, %c0_155] {strides = array<i32: 2, 1>} : memref<128x32xf32, #tpu.memory_space<vmem>>, vector<3x32xf32>
    %c106_156 = arith.constant 106 : index
    %c0_157 = arith.constant 0 : index
    %171 = tpu.strided_load %arg5[%c106_156, %c0_157] {strides = array<i32: 2, 1>} : memref<128x32xf32, #tpu.memory_space<vmem>>, vector<3x32xf32>
    %c122 = arith.constant 122 : index
    %c0_158 = arith.constant 0 : index
    %172 = tpu.strided_load %arg5[%c122, %c0_158] {strides = array<i32: 2, 1>} : memref<128x32xf32, #tpu.memory_space<vmem>>, vector<3x32xf32>
    %173 = tpu.concatenate %167, %168, %169, %170, %171, %172 in 0 : vector<3x32xf32>, vector<3x32xf32>, vector<3x32xf32>, vector<3x32xf32>, vector<3x32xf32>, vector<3x32xf32> -> vector<18x32xf32>
    %174 = arith.truncf %173 : vector<18x32xf32> to vector<18x32xbf16>
    %cst_159 = arith.constant dense<0.000000e+00> : vector<18x64xf32>
    %175 = tpu.matmul %174, %166, %cst_159 {dimension_numbers = #tpu.dot_dimension_numbers<[1], [0], [0], [1], [0, 0, 1, 1], [], []>} : vector<18x32xbf16>, vector<32x64xbf16>, vector<18x64xf32> -> vector<18x64xf32>
    %176 = arith.addf %165, %175 : vector<18x64xf32>
    %c736 = arith.constant 736 : index
    %c0_160 = arith.constant 0 : index
    %177 = vector.load %arg1[%c736, %c0_160] : memref<2368x64xbf16, #tpu.memory_space<vmem>>, vector<32x64xbf16>
    %c27_161 = arith.constant 27 : index
    %c0_162 = arith.constant 0 : index
    %178 = tpu.strided_load %arg5[%c27_161, %c0_162] {strides = array<i32: 2, 1>} : memref<128x32xf32, #tpu.memory_space<vmem>>, vector<3x32xf32>
    %c43_163 = arith.constant 43 : index
    %c0_164 = arith.constant 0 : index
    %179 = tpu.strided_load %arg5[%c43_163, %c0_164] {strides = array<i32: 2, 1>} : memref<128x32xf32, #tpu.memory_space<vmem>>, vector<3x32xf32>
    %c59 = arith.constant 59 : index
    %c0_165 = arith.constant 0 : index
    %180 = tpu.strided_load %arg5[%c59, %c0_165] {strides = array<i32: 2, 1>} : memref<128x32xf32, #tpu.memory_space<vmem>>, vector<3x32xf32>
    %c91_166 = arith.constant 91 : index
    %c0_167 = arith.constant 0 : index
    %181 = tpu.strided_load %arg5[%c91_166, %c0_167] {strides = array<i32: 2, 1>} : memref<128x32xf32, #tpu.memory_space<vmem>>, vector<3x32xf32>
    %c107_168 = arith.constant 107 : index
    %c0_169 = arith.constant 0 : index
    %182 = tpu.strided_load %arg5[%c107_168, %c0_169] {strides = array<i32: 2, 1>} : memref<128x32xf32, #tpu.memory_space<vmem>>, vector<3x32xf32>
    %c123 = arith.constant 123 : index
    %c0_170 = arith.constant 0 : index
    %183 = tpu.strided_load %arg5[%c123, %c0_170] {strides = array<i32: 2, 1>} : memref<128x32xf32, #tpu.memory_space<vmem>>, vector<3x32xf32>
    %184 = tpu.concatenate %178, %179, %180, %181, %182, %183 in 0 : vector<3x32xf32>, vector<3x32xf32>, vector<3x32xf32>, vector<3x32xf32>, vector<3x32xf32>, vector<3x32xf32> -> vector<18x32xf32>
    %185 = arith.truncf %184 : vector<18x32xf32> to vector<18x32xbf16>
    %cst_171 = arith.constant dense<0.000000e+00> : vector<18x64xf32>
    %186 = tpu.matmul %185, %177, %cst_171 {dimension_numbers = #tpu.dot_dimension_numbers<[1], [0], [0], [1], [0, 0, 1, 1], [], []>} : vector<18x32xbf16>, vector<32x64xbf16>, vector<18x64xf32> -> vector<18x64xf32>
    %187 = arith.addf %176, %186 : vector<18x64xf32>
    %188 = vector.broadcast %10 : vector<1x64xf32> to vector<18x64xf32>
    %189 = arith.addf %187, %188 : vector<18x64xf32>
    %cst_172 = arith.constant 0.000000e+00 : f32
    %190 = vector.broadcast %cst_172 : f32 to vector<18x64xf32>
    %191 = arith.maximumf %189, %190 : vector<18x64xf32>
    %c0_173 = arith.constant 0 : index
    %c0_174 = arith.constant 0 : index
    %192 = vector.load %arg6[%c0_173, %c0_174] : memref<18x64xf32, #tpu.memory_space<vmem>>, vector<18x64xf32>
    tpu.vector_store %arg6[%c0_173, %c0_174], %191 {strides = array<i32>} : memref<18x64xf32, #tpu.memory_space<vmem>>, vector<18x64xf32>,
    %c2_175 = arith.constant 2 : index
    %c0_176 = arith.constant 0 : index
    %193 = vector.load %arg3[%c2_175, %c0_176] : memref<8x1024xf32, #tpu.memory_space<vmem>>, vector<1x64xf32>
    %cst_177 = arith.constant 0.000000e+00 : f32
    %194 = vector.broadcast %cst_177 : f32 to vector<2x64xf32>
    %c768 = arith.constant 768 : index
    %c0_178 = arith.constant 0 : index
    %195 = vector.load %arg1[%c768, %c0_178] : memref<2368x64xbf16, #tpu.memory_space<vmem>>, vector<64x64xbf16>
    %c0_179 = arith.constant 0 : index
    %c0_180 = arith.constant 0 : index
    %196 = tpu.strided_load %arg6[%c0_179, %c0_180] {strides = array<i32: 9, 1>} : memref<18x64xf32, #tpu.memory_space<vmem>>, vector<2x64xf32>
    %197 = arith.truncf %196 : vector<2x64xf32> to vector<2x64xbf16>
    %cst_181 = arith.constant dense<0.000000e+00> : vector<2x64xf32>
    %198 = tpu.matmul %197, %195, %cst_181 {dimension_numbers = #tpu.dot_dimension_numbers<[1], [0], [0], [1], [0, 0, 1, 1], [], []>} : vector<2x64xbf16>, vector<64x64xbf16>, vector<2x64xf32> -> vector<2x64xf32>
    %199 = arith.addf %194, %198 : vector<2x64xf32>
    %c832 = arith.constant 832 : index
    %c0_182 = arith.constant 0 : index
    %200 = vector.load %arg1[%c832, %c0_182] : memref<2368x64xbf16, #tpu.memory_space<vmem>>, vector<64x64xbf16>
    %c1_183 = arith.constant 1 : index
    %c0_184 = arith.constant 0 : index
    %201 = tpu.strided_load %arg6[%c1_183, %c0_184] {strides = array<i32: 9, 1>} : memref<18x64xf32, #tpu.memory_space<vmem>>, vector<2x64xf32>
    %202 = arith.truncf %201 : vector<2x64xf32> to vector<2x64xbf16>
    %cst_185 = arith.constant dense<0.000000e+00> : vector<2x64xf32>
    %203 = tpu.matmul %202, %200, %cst_185 {dimension_numbers = #tpu.dot_dimension_numbers<[1], [0], [0], [1], [0, 0, 1, 1], [], []>} : vector<2x64xbf16>, vector<64x64xbf16>, vector<2x64xf32> -> vector<2x64xf32>
    %204 = arith.addf %199, %203 : vector<2x64xf32>
    %c896 = arith.constant 896 : index
    %c0_186 = arith.constant 0 : index
    %205 = vector.load %arg1[%c896, %c0_186] : memref<2368x64xbf16, #tpu.memory_space<vmem>>, vector<64x64xbf16>
    %c2_187 = arith.constant 2 : index
    %c0_188 = arith.constant 0 : index
    %206 = tpu.strided_load %arg6[%c2_187, %c0_188] {strides = array<i32: 9, 1>} : memref<18x64xf32, #tpu.memory_space<vmem>>, vector<2x64xf32>
    %207 = arith.truncf %206 : vector<2x64xf32> to vector<2x64xbf16>
    %cst_189 = arith.constant dense<0.000000e+00> : vector<2x64xf32>
    %208 = tpu.matmul %207, %205, %cst_189 {dimension_numbers = #tpu.dot_dimension_numbers<[1], [0], [0], [1], [0, 0, 1, 1], [], []>} : vector<2x64xbf16>, vector<64x64xbf16>, vector<2x64xf32> -> vector<2x64xf32>
    %209 = arith.addf %204, %208 : vector<2x64xf32>
    %c960 = arith.constant 960 : index
    %c0_190 = arith.constant 0 : index
    %210 = vector.load %arg1[%c960, %c0_190] : memref<2368x64xbf16, #tpu.memory_space<vmem>>, vector<64x64xbf16>
    %c3_191 = arith.constant 3 : index
    %c0_192 = arith.constant 0 : index
    %211 = tpu.strided_load %arg6[%c3_191, %c0_192] {strides = array<i32: 9, 1>} : memref<18x64xf32, #tpu.memory_space<vmem>>, vector<2x64xf32>
    %212 = arith.truncf %211 : vector<2x64xf32> to vector<2x64xbf16>
    %cst_193 = arith.constant dense<0.000000e+00> : vector<2x64xf32>
    %213 = tpu.matmul %212, %210, %cst_193 {dimension_numbers = #tpu.dot_dimension_numbers<[1], [0], [0], [1], [0, 0, 1, 1], [], []>} : vector<2x64xbf16>, vector<64x64xbf16>, vector<2x64xf32> -> vector<2x64xf32>
    %214 = arith.addf %209, %213 : vector<2x64xf32>
    %c1024 = arith.constant 1024 : index
    %c0_194 = arith.constant 0 : index
    %215 = vector.load %arg1[%c1024, %c0_194] : memref<2368x64xbf16, #tpu.memory_space<vmem>>, vector<64x64xbf16>
    %c4 = arith.constant 4 : index
    %c0_195 = arith.constant 0 : index
    %216 = tpu.strided_load %arg6[%c4, %c0_195] {strides = array<i32: 9, 1>} : memref<18x64xf32, #tpu.memory_space<vmem>>, vector<2x64xf32>
    %217 = arith.truncf %216 : vector<2x64xf32> to vector<2x64xbf16>
    %cst_196 = arith.constant dense<0.000000e+00> : vector<2x64xf32>
    %218 = tpu.matmul %217, %215, %cst_196 {dimension_numbers = #tpu.dot_dimension_numbers<[1], [0], [0], [1], [0, 0, 1, 1], [], []>} : vector<2x64xbf16>, vector<64x64xbf16>, vector<2x64xf32> -> vector<2x64xf32>
    %219 = arith.addf %214, %218 : vector<2x64xf32>
    %c1088 = arith.constant 1088 : index
    %c0_197 = arith.constant 0 : index
    %220 = vector.load %arg1[%c1088, %c0_197] : memref<2368x64xbf16, #tpu.memory_space<vmem>>, vector<64x64xbf16>
    %c5 = arith.constant 5 : index
    %c0_198 = arith.constant 0 : index
    %221 = tpu.strided_load %arg6[%c5, %c0_198] {strides = array<i32: 9, 1>} : memref<18x64xf32, #tpu.memory_space<vmem>>, vector<2x64xf32>
    %222 = arith.truncf %221 : vector<2x64xf32> to vector<2x64xbf16>
    %cst_199 = arith.constant dense<0.000000e+00> : vector<2x64xf32>
    %223 = tpu.matmul %222, %220, %cst_199 {dimension_numbers = #tpu.dot_dimension_numbers<[1], [0], [0], [1], [0, 0, 1, 1], [], []>} : vector<2x64xbf16>, vector<64x64xbf16>, vector<2x64xf32> -> vector<2x64xf32>
    %224 = arith.addf %219, %223 : vector<2x64xf32>
    %c1152 = arith.constant 1152 : index
    %c0_200 = arith.constant 0 : index
    %225 = vector.load %arg1[%c1152, %c0_200] : memref<2368x64xbf16, #tpu.memory_space<vmem>>, vector<64x64xbf16>
    %c6 = arith.constant 6 : index
    %c0_201 = arith.constant 0 : index
    %226 = tpu.strided_load %arg6[%c6, %c0_201] {strides = array<i32: 9, 1>} : memref<18x64xf32, #tpu.memory_space<vmem>>, vector<2x64xf32>
    %227 = arith.truncf %226 : vector<2x64xf32> to vector<2x64xbf16>
    %cst_202 = arith.constant dense<0.000000e+00> : vector<2x64xf32>
    %228 = tpu.matmul %227, %225, %cst_202 {dimension_numbers = #tpu.dot_dimension_numbers<[1], [0], [0], [1], [0, 0, 1, 1], [], []>} : vector<2x64xbf16>, vector<64x64xbf16>, vector<2x64xf32> -> vector<2x64xf32>
    %229 = arith.addf %224, %228 : vector<2x64xf32>
    %c1216 = arith.constant 1216 : index
    %c0_203 = arith.constant 0 : index
    %230 = vector.load %arg1[%c1216, %c0_203] : memref<2368x64xbf16, #tpu.memory_space<vmem>>, vector<64x64xbf16>
    %c7 = arith.constant 7 : index
    %c0_204 = arith.constant 0 : index
    %231 = tpu.strided_load %arg6[%c7, %c0_204] {strides = array<i32: 9, 1>} : memref<18x64xf32, #tpu.memory_space<vmem>>, vector<2x64xf32>
    %232 = arith.truncf %231 : vector<2x64xf32> to vector<2x64xbf16>
    %cst_205 = arith.constant dense<0.000000e+00> : vector<2x64xf32>
    %233 = tpu.matmul %232, %230, %cst_205 {dimension_numbers = #tpu.dot_dimension_numbers<[1], [0], [0], [1], [0, 0, 1, 1], [], []>} : vector<2x64xbf16>, vector<64x64xbf16>, vector<2x64xf32> -> vector<2x64xf32>
    %234 = arith.addf %229, %233 : vector<2x64xf32>
    %c1280 = arith.constant 1280 : index
    %c0_206 = arith.constant 0 : index
    %235 = vector.load %arg1[%c1280, %c0_206] : memref<2368x64xbf16, #tpu.memory_space<vmem>>, vector<64x64xbf16>
    %c8_207 = arith.constant 8 : index
    %c0_208 = arith.constant 0 : index
    %236 = tpu.strided_load %arg6[%c8_207, %c0_208] {strides = array<i32: 9, 1>} : memref<18x64xf32, #tpu.memory_space<vmem>>, vector<2x64xf32>
    %237 = arith.truncf %236 : vector<2x64xf32> to vector<2x64xbf16>
    %cst_209 = arith.constant dense<0.000000e+00> : vector<2x64xf32>
    %238 = tpu.matmul %237, %235, %cst_209 {dimension_numbers = #tpu.dot_dimension_numbers<[1], [0], [0], [1], [0, 0, 1, 1], [], []>} : vector<2x64xbf16>, vector<64x64xbf16>, vector<2x64xf32> -> vector<2x64xf32>
    %239 = arith.addf %234, %238 : vector<2x64xf32>
    %240 = vector.broadcast %193 : vector<1x64xf32> to vector<2x64xf32>
    %241 = arith.addf %239, %240 : vector<2x64xf32>
    %cst_210 = arith.constant 0.000000e+00 : f32
    %242 = vector.broadcast %cst_210 : f32 to vector<2x64xf32>
    %243 = arith.maximumf %241, %242 : vector<2x64xf32>
    %c3_211 = arith.constant 3 : index
    %c0_212 = arith.constant 0 : index
    %244 = vector.load %arg3[%c3_211, %c0_212] : memref<8x1024xf32, #tpu.memory_space<vmem>>, vector<1x1024xf32>
    %c4_213 = arith.constant 4 : index
    %c0_214 = arith.constant 0 : index
    %245 = vector.load %arg3[%c4_213, %c0_214] : memref<8x1024xf32, #tpu.memory_space<vmem>>, vector<1x64xf32>
    %246 = arith.truncf %243 : vector<2x64xf32> to vector<2x64xbf16>
    %c0_215 = arith.constant 0 : index
    %c0_216 = arith.constant 0 : index
    %247 = vector.load %arg2[%c0_215, %c0_216] : memref<64x1024xbf16, #tpu.memory_space<vmem>>, vector<64x1024xbf16>
    %cst_217 = arith.constant dense<0.000000e+00> : vector<2x1024xf32>
    %248 = tpu.matmul %246, %247, %cst_217 {dimension_numbers = #tpu.dot_dimension_numbers<[1], [0], [0], [1], [0, 0, 1, 1], [], []>} : vector<2x64xbf16>, vector<64x1024xbf16>, vector<2x1024xf32> -> vector<2x1024xf32>
    %249 = vector.broadcast %244 : vector<1x1024xf32> to vector<2x1024xf32>
    %250 = arith.addf %248, %249 : vector<2x1024xf32>
    %cst_218 = arith.constant 0.000000e+00 : f32
    %251 = vector.broadcast %cst_218 : f32 to vector<2x1024xf32>
    %252 = arith.maximumf %250, %251 : vector<2x1024xf32>
    %c1344 = arith.constant 1344 : index
    %c0_219 = arith.constant 0 : index
    %253 = vector.load %arg1[%c1344, %c0_219] : memref<2368x64xbf16, #tpu.memory_space<vmem>>, vector<1024x64xbf16>
    %254 = arith.truncf %252 : vector<2x1024xf32> to vector<2x1024xbf16>
    %cst_220 = arith.constant dense<0.000000e+00> : vector<2x64xf32>
    %255 = tpu.matmul %254, %253, %cst_220 {dimension_numbers = #tpu.dot_dimension_numbers<[1], [0], [0], [1], [0, 0, 1, 1], [], []>} : vector<2x1024xbf16>, vector<1024x64xbf16>, vector<2x64xf32> -> vector<2x64xf32>
    %256 = vector.broadcast %245 : vector<1x64xf32> to vector<2x64xf32>
    %257 = arith.addf %255, %256 : vector<2x64xf32>
    %258 = vector.extract_strided_slice %257 {offsets = [0, 0], sizes = [2, 6], strides = [1, 1]} : vector<2x64xf32> to vector<2x6xf32>
    %259 = vector.extract_strided_slice %257 {offsets = [0, 6], sizes = [2, 1], strides = [1, 1]} : vector<2x64xf32> to vector<2x1xf32>
    %260 = vector.broadcast %259 : vector<2x1xf32> to vector<2x6xf32>
    %261 = arith.addf %260, %258 : vector<2x6xf32>
    %262 = vector.shape_cast %258 : vector<2x6xf32> to vector<1x2x6xf32>
    %cst_221 = arith.constant dense<0.000000e+00> : vector<1xf32>
    %263 = vector.multi_reduction <add>, %262, %cst_221 [1, 2] : vector<1x2x6xf32> to vector<1xf32>
    %264 = vector.shape_cast %263 : vector<1xf32> to vector<1x1x1xf32>
    %265 = vector.extract %264[0, 0, 0] : f32 from vector<1x1x1xf32>
    %cst_222 = arith.constant 1.200000e+01 : f32
    %266 = arith.divf %265, %cst_222 : f32
    %267 = vector.broadcast %266 : f32 to vector<2x6xf32>
    %268 = arith.subf %261, %267 : vector<2x6xf32>
    %c0_223 = arith.constant 0 : index
    %c0_224 = arith.constant 0 : index
    %269 = vector.load %arg4[%c0_223, %c0_224] : memref<2x6xf32, #tpu.memory_space<vmem>>, vector<2x6xf32>
    tpu.vector_store %arg4[%c0_223, %c0_224], %268 {strides = array<i32>} : memref<2x6xf32, #tpu.memory_space<vmem>>, vector<2x6xf32>,
    return
  }
}

</mosaic_0001>

<bundles_post_ra>
// kernel: ddqn_forward.1
= control target key start
LH: loop header
LB: loop body
LE: loop exit
PB: predicated region body
PF: predicated region fallthrough
CT: control target
= control target key end

     0   :  { %s6018_s0 = inlined_call_operand.vmem [shape: bf16[128,256], index: 0, kind: input, shape index: {}]   ;;  %s6019_s1 = inlined_call_operand.vmem [shape: bf16[2368,64], index: 1, kind: input, shape index: {}]   ;;  %s6020_s2 = inlined_call_operand.vmem [shape: bf16[64,1024], index: 2, kind: input, shape index: {}]   ;;  %s6021_s3 = inlined_call_operand.vmem [shape: f32[8,1024], index: 3, kind: input, shape index: {}]   ;;  %s6022_s4 = inlined_call_operand.hbm [shape: f32[2,6], index: 4, kind: output, shape index: {}]  }
   0x1   :  { %v4614_v0 = vld [vmem:[%s6019_s1 + $0x78] sm:$0xff]   ;;  %v4616_v2 = vld [vmem:[%s6019_s1 + $0x70] sm:$0xff]   ;;  %v4618_v4 = vld [vmem:[%s6019_s1 + $0x68] sm:$0xff]  }
   0x2   :  { %v4615_v1 = vld [vmem:[%s6019_s1 + $0x38] sm:$0xff]   ;;  %4109 = vmatprep.subr.bf16.mxu0 %v4614_v0  ;;  %v4617_v3 = vld [vmem:[%s6019_s1 + $0x30] sm:$0xff]   ;;  %v4619_v5 = vld [vmem:[%s6019_s1 + $0x28] sm:$0xff]  }
   0x3   :  { %4110 = vmatpush3.bf16.msra.mxu0 %v4615_v1  ;;  %v4620_v6 = vld [vmem:[%s6019_s1 + $0x60] sm:$0xff]   ;;  %v4622_v8 = vld [vmem:[%s6019_s1 + $0x58] sm:$0xff]   ;;  %v4624_v10 = vld [vmem:[%s6019_s1 + $0x50] sm:$0xff]  }
   0x4   :  { %4111 = vmatprep.subr.bf16.mxu0 %v4616_v2  ;;  %v4621_v7 = vld [vmem:[%s6019_s1 + $0x20] sm:$0xff]   ;;  %v4623_v9 = vld [vmem:[%s6019_s1 + $0x18] sm:$0xff]   ;;  %v4625_v12 = vld [vmem:[%s6019_s1 + $0x10] sm:$0xff]  }
   0x5   :  { %v4632_v11 = vld [vmem:[%s6018_s0 + $0x4] ss:$8 sps:$4 sm:$0xff]   ;;  %v4630_v17 = vld [vmem:[%s6018_s0] ss:$8 sps:$4 sm:$0xff]   ;;  %v4633_v18 = vld [vmem:[%s6018_s0 + $0x14] ss:$8 sps:$4 sm:$0xff]  }
   0x6   :  { %275 = vmatprep.mubr.bf16.mxu0 %v4632_v11  ;;  %v4626_v13 = vld [vmem:[%s6019_s1 + $0x48] sm:$0xff]   ;;  %v4628_v15 = vld [vmem:[%s6019_s1 + $0x40] sm:$0xff]   ;;  %v4635_v19 = vld [vmem:[%s6018_s0 + $0x10] ss:$8 sps:$4 sm:$0xff]  }
   0x7   :  { %4112 = vmatpush3.bf16.msra.mxu0 %v4617_v3  ;;  %v4627_v14 = vld [vmem:[%s6019_s1 + $0x8] sm:$0xff]   ;;  %v4629_v16 = vld [vmem:[%s6019_s1] sm:$0xff]   ;;  %v4639_v22 = vld [vmem:[%s6018_s0 + $0x34] ss:$8 sps:$4 sm:$0xff]  }
   0x8   :  { %4113 = vmatprep.subr.bf16.mxu0 %v4618_v4  ;;  %v4636_v20 = vld [vmem:[%s6018_s0 + $0x24] ss:$8 sps:$4 sm:$0xff]   ;;  %v4638_v21 = vld [vmem:[%s6018_s0 + $0x20] ss:$8 sps:$4 sm:$0xff]   ;;  %v4641_v23 = vld [vmem:[%s6018_s0 + $0x30] ss:$8 sps:$4 sm:$0xff]  }
   0x9   :  { %v4642_v24 = vld [vmem:[%s6018_s0 + $0x44] ss:$8 sps:$4 sm:$0xff]   ;;  %v4644_v25 = vld [vmem:[%s6018_s0 + $0x40] ss:$8 sps:$4 sm:$0xff]   ;;  %v4645_v26 = vld [vmem:[%s6018_s0 + $0x54] ss:$8 sps:$4 sm:$0xff]  }
   0xa   :  { %v4647_v27 = vld [vmem:[%s6018_s0 + $0x50] ss:$8 sps:$4 sm:$0xff]   ;;  %v4648_v28 = vld [vmem:[%s6018_s0 + $0x64] ss:$8 sps:$4 sm:$0xff]   ;;  %v4650_v29 = vld [vmem:[%s6018_s0 + $0x60] ss:$8 sps:$4 sm:$0xff]  }
   0xb   :  { %4114 = vmatpush3.bf16.msra.mxu0 %v4619_v5  ;;  %v4651_v30 = vld [vmem:[%s6018_s0 + $0x74] ss:$8 sps:$4 sm:$0xff]   ;;  %v4653_v31 = vld [vmem:[%s6018_s0 + $0x70] ss:$8 sps:$4 sm:$0xff]  }
   0xc   :  { %4115 = vmatprep.subr.bf16.mxu0 %v4620_v6 }
   0xf   :  { %4116 = vmatpush3.bf16.msra.mxu0 %v4621_v7 }
  0x10   :  { %4117 = vmatprep.subr.bf16.mxu0 %v4622_v8 }
  0x13   :  { %4118 = vmatpush3.bf16.msra.mxu0 %v4623_v9 }
  0x14   :  { %4119 = vmatprep.subr.bf16.mxu0 %v4624_v10 }
  0x17   :  { %4120 = vmatpush3.bf16.msra.mxu0 %v4625_v12 }
  0x18   :  { %4121 = vmatprep.subr.bf16.mxu0 %v4626_v13 }
  0x1b   :  { %4122 = vmatpush3.bf16.msra.mxu0 %v4627_v14 }
  0x1c   :  { %4123 = vmatprep.subr.bf16.mxu0 %v4628_v15 }
  0x1f   :  { %4124 = vmatpush3.bf16.msra.mxu0 %v4629_v16 }
  0x22   :  { %276 = vmatmul.mubr.bf16.vlgmr.msra.gmra.mxu0 %v4630_v17 }
  0x23   :  { %283 = vmatprep.mubr.bf16.mxu0 %v4633_v18 }
  0x2a   :  { %284 = vmatmul.mubr.bf16.gmra.mxu0 %v4635_v19 }
  0x2b   :  { %291 = vmatprep.mubr.bf16.mxu0 %v4636_v20 }
  0x32   :  { %292 = vmatmul.mubr.bf16.gmra.mxu0 %v4638_v21 }
  0x33   :  { %299 = vmatprep.mubr.bf16.mxu0 %v4639_v22 }
  0x3a   :  { %300 = vmatmul.mubr.bf16.gmra.mxu0 %v4641_v23 }
  0x3b   :  { %307 = vmatprep.mubr.bf16.mxu0 %v4642_v24 }
  0x42   :  { %308 = vmatmul.mubr.bf16.gmra.mxu0 %v4644_v25 }
  0x43   :  { %315 = vmatprep.mubr.bf16.mxu0 %v4645_v26 }
  0x4a   :  { %316 = vmatmul.mubr.bf16.gmra.mxu0 %v4647_v27 }
  0x4b   :  { %323 = vmatprep.mubr.bf16.mxu0 %v4648_v28 }
  0x52   :  { %324 = vmatmul.mubr.bf16.gmra.mxu0 %v4650_v29 }
  0x53   :  { %331 = vmatprep.mubr.bf16.mxu0 %v4651_v30 }
  0x5a   :  { %332 = vmatmul.mubr.bf16.gmra.mxu0 %v4653_v31 }
  0x5b   :  { %9 = vsyncpa [#allocation5], 0  ;;  %v4654_v32 = vld [vmem:[%s6019_s1 + $0x98] sm:$0xff]   ;;  %v4655_v33 = vld [vmem:[%s6019_s1 + $0x90] sm:$0xff]   ;;  %vm373_vm0 = vcmask 261120   ;;  %vm421_vm1 = vcmask 1042432  }
  0x5c   :  { %4370 = vmatprep.subr.bf16.mxu1 %v4654_v32  ;;  %v4943_v34 = vld [vmem:[%s6019_s1 + $0x88] sm:$0xff]   ;;  %v4657_v35 = vld [vmem:[%s6019_s1 + $0x138] sm:$0xff]   ;;  %v4659_v36 = vld [vmem:[%s6019_s1 + $0x130] sm:$0xff]   ;;  %vm423_vm2 = vcmask 1045504   ;;  %vm425_vm3 = vcmask 1040384   ;;  %vm427_vm4 = vcmask 1043456  }
  0x5d   :  { %4371 = vmatpush3.bf16.msra.mxu1 %v4654_v32  ;;  %4458 = vmatprep.subr.bf16.mxu0 %v4657_v35  ;;  %v4955_v37 = vld [vmem:[%s6019_s1 + $0x158] sm:$0xff]   ;;  %v4961_v40 = vld [vmem:[%s6021_s3] ss:$0 sm:$0xff]  ;;  %vm429_vm5 = vcmask 1046528   ;;  %vm4809_vm6 = vmmov 0   ;;  %vm2022_vm7 = vcmask 517120  }
  0x5e   :  { %4372 = vmatprep.subr.bf16.mxu1 %v4655_v33  ;;  %4459 = vmatpush3.bf16.msra.mxu0 %v4657_v35  ;;  %vm2019_vm8 = vcmask 523264   ;;  %vm3835_vm9 = vcmask 41984   ;;  %s4812_s11 = smov [#allocation4]  }
  0x5f   :  { %4460 = vmatprep.subr.bf16.mxu0 %v4659_v36  ;;  %s3858_s12 = sshll.u32 %s4812_s11, 4  ;;  %s3859_s12 = int_to_ptr.vmem [resolvable:$true] %s3858_s12 }
  0x60   :  { %s4786_s13 = scalar_lea.vmem %s3859_s12, 32  ;;  %p4791_p1 = scmp.lt.s32.totalorder %s3859_s12, %s3859_s12 }
  0x61   :  { %4373 = vmatpush3.bf16.msra.mxu1 %v4655_v33  ;;  %p4787_p0 = scmp.ne.s32.totalorder %s3859_s12, %s4786_s13  ;;  %p4792_p2 = scmp.lt.s32.totalorder %s4786_s13, %s4786_s13 }
  0x62   :  { %4378 = vmatprep.subr.bf16.mxu1 %v4943_v34  ;;  %4461 = vmatpush3.bf16.msra.mxu0 %v4659_v36 }
  0x63   :  { %4474 = vmatprep.subr.bf16.mxu0 %v4955_v37  ;;  %p4793_p3 = por %p4792_p2, %p4791_p1 }
  0x65   :  { %p4794_p4 = pnand %p4793_p3, %p4787_p0 }
  0xe2   :  { %v4125_v38 = vpop.f32.mrf.mxu0 }
  0xe4   :  { %v4126_v39 = vpop.f32.mrf.mxu0 }
  0xe5   :  { %v4127_v41 = vadd.f32 %v4126_v39, %v4125_v38 }
  0xe6   :  { %v4128_v42 = vpop.f32.mrf.mxu0 }
  0xe7   :  { %v341_v43 = vadd.f32 %v4127_v41, %v4961_v40 }
  0xe8   :  { %v4129_v44 = vpop.f32.mrf.mxu0 }
  0xe9   :  { %v357_v45 = vmax.f32 %v341_v43, 0.0  ;;  %v4130_v46 = vadd.f32 %v4129_v44, %v4128_v42 }
  0xea   :  { %v4131_v47 = vpop.f32.mrf.mxu0 }
  0xeb   :  { %374 = vst.msk [vmem:[#allocation2] sm:$0xff] %vm373_vm0, %v357_v45  ;;  %v342_v48 = vadd.f32 %v4130_v46, %v4961_v40 }
  0xec   :  { %v4132_v49 = vpop.f32.mrf.mxu0 }
  0xed   :  { %v358_v50 = vmax.f32 %v342_v48, 0.0  ;;  %v4133_v51 = vadd.f32 %v4132_v49, %v4131_v47 }
  0xee   :  { %v4134_v52 = vpop.f32.mrf.mxu0 }
  0xef   :  { %375 = vst.msk [vmem:[#allocation2 + $0x8] sm:$0xff] %vm373_vm0, %v358_v50  ;;  %v343_v53 = vadd.f32 %v4133_v51, %v4961_v40 }
  0xf0   :  { %v4135_v54 = vpop.f32.mrf.mxu0 }
  0xf1   :  { %v359_v55 = vmax.f32 %v343_v53, 0.0  ;;  %v4136_v56 = vadd.f32 %v4135_v54, %v4134_v52 }
  0xf2   :  { %v4137_v57 = vpop.f32.mrf.mxu0 }
  0xf3   :  { %376 = vst.msk [vmem:[#allocation2 + $0x10] sm:$0xff] %vm373_vm0, %v359_v55  ;;  %v344_v58 = vadd.f32 %v4136_v56, %v4961_v40 }
  0xf4   :  { %v4138_v59 = vpop.f32.mrf.mxu0 }
  0xf5   :  { %v360_v60 = vmax.f32 %v344_v58, 0.0  ;;  %v4139_v61 = vadd.f32 %v4138_v59, %v4137_v57 }
  0xf6   :  { %v4140_v62 = vpop.f32.mrf.mxu0 }
  0xf7   :  { %377 = vst.msk [vmem:[#allocation2 + $0x18] sm:$0xff] %vm373_vm0, %v360_v60  ;;  %v345_v63 = vadd.f32 %v4139_v61, %v4961_v40 }
  0xf8   :  { %v4141_v0 = vpop.f32.mrf.mxu0 }
  0xf9   :  { %v361_v1 = vmax.f32 %v345_v63, 0.0  ;;  %v4142_v2 = vadd.f32 %v4141_v0, %v4140_v62 }
  0xfa   :  { %v4143_v3 = vpop.f32.mrf.mxu0  ;;  %v4990_v30 = vld [vmem:[#allocation2 + $0x11] ss:$2 sm:$0x7]  ;;  %v4992_v32 = vld [vmem:[#allocation2 + $0x12] ss:$2 sm:$0x7] }
  0xfb   :  { %378 = vst.msk [vmem:[#allocation2 + $0x20] sm:$0xff] %vm373_vm0, %v361_v1  ;;  %v346_v4 = vadd.f32 %v4142_v2, %v4961_v40 }
  0xfc   :  { %v4144_v5 = vpop.f32.mrf.mxu0 }
  0xfd   :  { %v362_v6 = vmax.f32 %v346_v4, 0.0  ;;  %v4145_v7 = vadd.f32 %v4144_v5, %v4143_v3  ;;  %v5041_v5 = vld [vmem:[#allocation2 + $0x10] ss:$2 sm:$0x7] }
  0xfe   :  { %v4146_v8 = vpop.f32.mrf.mxu0  ;;  %v5008_v47 = vld [vmem:[#allocation2 + $0x18] ss:$2 sm:$0x7] }
  0xff   :  { %379 = vst.msk [vmem:[#allocation2 + $0x28] sm:$0xff] %vm373_vm0, %v362_v6  ;;  %v347_v9 = vadd.f32 %v4145_v7, %v4961_v40  ;;  %v5037_v0 = vld [vmem:[#allocation2 + $0x1a] ss:$2 sm:$0x7] }
 0x100   :  { %v4147_v10 = vpop.f32.mrf.mxu0  ;;  %v5043_v6 = vld [vmem:[#allocation2 + $0x13] ss:$2 sm:$0x7] }
 0x101   :  { %v363_v11 = vmax.f32 %v347_v9, 0.0  ;;  %v4148_v12 = vadd.f32 %v4147_v10, %v4146_v8  ;;  %v450_v10 = vrot.slane %v4990_v30, 5 }
 0x102   :  { %v4149_v13 = vpop.f32.mrf.mxu0  ;;  %v4980_v20 = vld [vmem:[#allocation2 + $0x21] ss:$2 sm:$0x7]  ;;  %v4982_v21 = vld [vmem:[#allocation2 + $0x22] ss:$2 sm:$0x7] }
 0x103   :  { %380 = vst.msk [vmem:[#allocation2 + $0x30] sm:$0xff] %vm373_vm0, %v363_v11  ;;  %v348_v14 = vadd.f32 %v4148_v12, %v4961_v40  ;;  %v1349_v26 = vrot.slane %v4980_v20, 5  ;;  %v1445_v27 = vrot.slane %v4982_v21, 5 }
 0x104   :  { %v4150_v15 = vpop.f32.mrf.mxu0 }
 0x105   :  { %v364_v16 = vmax.f32 %v348_v14, 0.0  ;;  %v4151_v17 = vadd.f32 %v4150_v15, %v4149_v13  ;;  %v1361_v44 = vsel %vm421_vm1, %v4990_v30, %v1349_v26  ;;  %v1457_v45 = vsel %vm421_vm1, %v4992_v32, %v1445_v27 }
 0x106   :  { %v4152_v18 = vpop.f32.mrf.mxu0  ;;  %v4986_v28 = vld [vmem:[#allocation2 + $0x28] ss:$2 sm:$0x7]  ;;  %v407_v13 = vrot.slane %v5041_v5, 5  ;;  %v727_v14 = vrot.slane %v5043_v6, 5 }
 0x107   :  { %381 = vst.msk [vmem:[#allocation2 + $0x38] sm:$0xff] %vm373_vm0, %v364_v16  ;;  %v349_v19 = vadd.f32 %v4151_v17, %v4961_v40  ;;  %v1637_v38 = vrot.slane %v4986_v28, 5  ;;  %v5000_v43 = vld [vmem:[#allocation2 + $0x2a] ss:$2 sm:$0x7] }
 0x108   :  { %v4153_v22 = vpop.f32.mrf.mxu0  ;;  %v1829_v56 = vrot.slane %v5000_v43, 5  ;;  %v438_v16 = vld [vmem:[#allocation2 + $0x1] ss:$2 sm:$0x7] }
 0x109   :  { %v365_v23 = vmax.f32 %v349_v19, 0.0  ;;  %v4154_v24 = vadd.f32 %v4153_v22, %v4152_v18  ;;  %v1649_v57 = vsel %vm421_vm1, %v5008_v47, %v1637_v38  ;;  %v5055_v17 = vld [vmem:[#allocation2 + $0x20] ss:$2 sm:$0x7] }
 0x10a   :  { %v4155_v25 = vpop.f32.mrf.mxu0  ;;  %v4994_v33 = vld [vmem:[#allocation2 + $0x31] ss:$2 sm:$0x7]  ;;  %v4998_v41 = vld [vmem:[#allocation2 + $0x32] ss:$2 sm:$0x7]  ;;  %v1841_v3 = vsel %vm421_vm1, %v5037_v0, %v1829_v56 }
 0x10b   :  { %382 = vst.msk [vmem:[#allocation2 + $0x40] sm:$0xff] %vm373_vm0, %v365_v23  ;;  %v350_v29 = vadd.f32 %v4154_v24, %v4961_v40  ;;  %v1352_v39 = vrot.slane %v4994_v33, 2  ;;  %v6025_v51 = vrot.slane %v4998_v41, 2  ;;  %v5057_v18 = vld [vmem:[#allocation2 + $0x23] ss:$2 sm:$0x7] }
 0x10c   :  { %v4156_v31 = vpop.f32.mrf.mxu0  ;;  %v395_v24 = vld [vmem:[#allocation2] ss:$2 sm:$0x7]  ;;  %v5061_v27 = vld [vmem:[#allocation2 + $0x29] ss:$2 sm:$0x7] }
 0x10d   :  { %v366_v35 = vmax.f32 %v350_v29, 0.0  ;;  %v4157_v36 = vadd.f32 %v4156_v31, %v4155_v25  ;;  %v5013_v48 = vsel %vm423_vm2, %v1361_v44, %v1352_v39  ;;  %v5027_v59 = vsel %vm423_vm2, %v1457_v45, %v6025_v51 }
 0x10e   :  { %v4158_v42 = vpop.f32.mrf.mxu0  ;;  %v5015_v49 = vld [vmem:[#allocation2 + $0x38] ss:$2 sm:$0x7]  ;;  %v464_v31 = vsel %vm421_vm1, %v438_v16, %v450_v10  ;;  %v1733_v10 = vrot.slane %v5061_v27, 5 }
 0x10f   :  { %383 = vst.msk [vmem:[#allocation2 + $0x48] sm:$0xff] %vm373_vm0, %v366_v35  ;;  %v351_v46 = vadd.f32 %v4157_v36, %v4961_v40  ;;  %v6024_v52 = vrot.slane %v5015_v49, 2  ;;  %v5019_v53 = vld [vmem:[#allocation2 + $0x3a] ss:$2 sm:$0x7]  ;;  %v620_v36 = vrot.slane %v4992_v32, 5 }
 0x110   :  { %v4159_v50 = vpop.f32.mrf.mxu0  ;;  %v6023_v62 = vrot.slane %v5019_v53, 2  ;;  %v715_v32 = vld [vmem:[#allocation2 + $0x3] ss:$2 sm:$0x7] }
 0x111   :  { %v367_v54 = vmax.f32 %v351_v46, 0.0  ;;  %v4160_v55 = vadd.f32 %v4159_v50, %v4158_v42  ;;  %v5032_v60 = vsel %vm423_vm2, %v1649_v57, %v6024_v52  ;;  %v453_v42 = vrot.slane %v4980_v20, 2  ;;  %v5069_v50 = vld [vmem:[#allocation2 + $0x33] ss:$2 sm:$0x7] }
 0x112   :  { %v4161_v58 = vpop.f32.mrf.mxu0  ;;  %v5048_v7 = vsel %vm423_vm2, %v1841_v3, %v6023_v62  ;;  %v444_v22 = vld [vmem:[#allocation2 + $0x41] ss:$2 sm:$0x7]  ;;  %v401_v26 = vld [vmem:[#allocation2 + $0x40] ss:$2 sm:$0x7]  ;;  %v422_v46 = vsel %vm421_vm1, %v395_v24, %v407_v13  ;;  %v741_v16 = vsel %vm421_vm1, %v715_v32, %v727_v14 }
 0x113   :  { %384 = vst.msk [vmem:[#allocation2 + $0x50] sm:$0xff] %vm373_vm0, %v367_v54  ;;  %v352_v61 = vadd.f32 %v4160_v55, %v4961_v40  ;;  %v456_v44 = vrot.slane %v444_v22, 7  ;;  %v410_v55 = vrot.slane %v5055_v17, 2  ;;  %v413_v56 = vrot.slane %v401_v26, 7 }
 0x114   :  { %v4162_v63 = vpop.f32.mrf.mxu0  ;;  %v1541_v57 = vrot.slane %v5057_v18, 5  ;;  %v5099_v26 = vld [vmem:[#allocation2 + $0x2b] ss:$2 sm:$0x7]  ;;  %v465_v14 = vsel %vm423_vm2, %v464_v31, %v453_v42 }
 0x115   :  { %v368_v1 = vmax.f32 %v352_v61, 0.0  ;;  %v4163_v2 = vadd.f32 %v4162_v63, %v4161_v58  ;;  %v608_v58 = vld [vmem:[#allocation2 + $0x2] ss:$2 sm:$0x7] }
 0x116   :  { %v4164_v4 = vpop.f32.mrf.mxu0 }
 0x117   :  { %385 = vst.msk [vmem:[#allocation2 + $0x58] sm:$0xff] %vm373_vm0, %v368_v1  ;;  %v353_v8 = vadd.f32 %v4163_v2, %v4961_v40  ;;  %v623_v1 = vrot.slane %v4982_v21, 2  ;;  %v730_v2 = vrot.slane %v5057_v18, 2 }
 0x118   :  { %v4165_v9 = vpop.f32.mrf.mxu0 }
 0x119   :  { %v369_v11 = vmax.f32 %v353_v8, 0.0  ;;  %v4166_v12 = vadd.f32 %v4165_v9, %v4164_v4  ;;  %v1544_v8 = vrot.slane %v5069_v50, 2  ;;  %v614_v9 = vld [vmem:[#allocation2 + $0x42] ss:$2 sm:$0x7] }
 0x11a   :  { %v4167_v15 = vpop.f32.mrf.mxu0  ;;  %v446_v23 = vld [vmem:[#allocation2 + $0x51] ss:$2 sm:$0x7]  ;;  %v5064_v35 = vld [vmem:[#allocation2 + $0x50] ss:$2 sm:$0x7] }
 0x11b   :  { %386 = vst.msk [vmem:[#allocation2 + $0x60] sm:$0xff] %vm373_vm0, %v369_v11  ;;  %v354_v19 = vadd.f32 %v4166_v12, %v4961_v40  ;;  %v1354_v45 = vrot.slane %v446_v23, 7  ;;  %v459_v63 = vrot.slane %v446_v23, 4  ;;  %v416_v20 = vrot.slane %v5064_v35, 4 }
 0x11c   :  { %v4168_v25 = vpop.f32.mrf.mxu0  ;;  %v466_v12 = vsel %vm425_vm3, %v453_v42, %v456_v44  ;;  %v5113_v44 = vld [vmem:[#allocation2 + $0x3b] ss:$2 sm:$0x7] }
 0x11d   :  { %v370_v29 = vmax.f32 %v354_v19, 0.0  ;;  %v4169_v30 = vadd.f32 %v4168_v25, %v4167_v15  ;;  %v634_v15 = vsel %vm421_vm1, %v608_v58, %v620_v36  ;;  %v5090_v19 = vsel %vm425_vm3, %v1352_v39, %v1354_v45  ;;  %v5109_v36 = vld [vmem:[#allocation2 + $0x19] ss:$2 sm:$0x7] }
 0x11e   :  { %v4170_v38 = vpop.f32.mrf.mxu0  ;;  %v426_v25 = vsel %vm425_vm3, %v410_v55, %v413_v56  ;;  %v467_v33 = vsel %vm427_vm4, %v466_v12, %v459_v63  ;;  %v424_v39 = vsel %vm423_vm2, %v422_v46, %v410_v55  ;;  %v626_v46 = vrot.slane %v614_v9, 7  ;;  %v5120_v55 = vld [vmem:[#allocation2 + $0x43] ss:$2 sm:$0x7] }
 0x11f   :  { %387 = vst.msk [vmem:[#allocation2 + $0x68] sm:$0xff] %vm373_vm0, %v370_v29  ;;  %v355_v54 = vadd.f32 %v4169_v30, %v4961_v40  ;;  %v428_v29 = vsel %vm427_vm4, %v426_v25, %v416_v20  ;;  %v5105_v30 = vld [vmem:[#allocation2 + $0x53] ss:$2 sm:$0x7]  ;;  %v1553_v58 = vsel %vm421_vm1, %v5043_v6, %v1541_v57  ;;  %v5134_v63 = vsel %vm423_vm2, %v741_v16, %v730_v2  ;;  %v4658_v6 = vld [vmem:[%s6019_s1 + $0x80] sm:$0xff]  }
 0x120   :  { %v4171_v61 = vpop.f32.mrf.mxu0  ;;  %v5136_v20 = vld [vmem:[#allocation2 + $0x48] ss:$2 sm:$0x7]  ;;  %v1546_v57 = vrot.slane %v5105_v30, 7  ;;  %v1745_v9 = vsel %vm421_vm1, %v5109_v36, %v1733_v10  ;;  %v1925_v12 = vrot.slane %v5099_v26, 5  ;;  %v1554_v10 = vsel %vm423_vm2, %v1553_v58, %v1544_v8 }
 0x121   :  { %v371_v3 = vmax.f32 %v355_v54, 0.0  ;;  %v4172_v4 = vadd.f32 %v4171_v61, %v4170_v38  ;;  %v5111_v38 = vld [vmem:[#allocation2 + $0x39] ss:$2 sm:$0x7]  ;;  %v5129_v61 = vsel %vm423_vm2, %v634_v15, %v623_v1  ;;  %v733_v58 = vrot.slane %v5120_v55, 7 }
 0x122   :  { %v5080_v11 = vld [vmem:[#allocation2 + $0x61] ss:$2 sm:$0x7]  ;;  %v5083_v13 = vld [vmem:[#allocation2 + $0x60] ss:$2 sm:$0x7] }
 0x123   :  { %388 = vst.msk [vmem:[#allocation2 + $0x70] sm:$0xff] %vm373_vm0, %v371_v3  ;;  %v356_v22 = vadd.f32 %v4172_v4, %v4961_v40  ;;  %v462_v23 = vrot.slane %v5080_v11, 1  ;;  %v5096_v24 = vrot.slane %v5083_v13, 1  ;;  %v5107_v40 = vld [vmem:[#allocation2 + $0x52] ss:$2 sm:$0x7] }
 0x124   :  { %v5118_v42 = vld [vmem:[#allocation2 + $0x63] ss:$2 sm:$0x7]  ;;  %v5124_v32 = vld [vmem:[#allocation2 + $0x62] ss:$2 sm:$0x7] }
 0x125   :  { %v372_v45 = vmax.f32 %v356_v22, 0.0  ;;  %v468_v54 = vsel %vm429_vm5, %v467_v33, %v462_v23  ;;  %v430_v31 = vsel %vm429_vm5, %v428_v29, %v5096_v24  ;;  %v470_v3 = vpack.c.bf16 %v462_v23, %v462_v23  ;;  %v5143_v4 = vld [vmem:[#allocation2 + $0x59] ss:$2 sm:$0x7] }
 0x126   :  { %v469_v56 = vpack.c.bf16 %v468_v54, %v465_v14  ;;  %v431_v15 = vpack.c.bf16 %v430_v31, %v424_v39  ;;  %v1548_v16 = vrot.slane %v5118_v42, 4  ;;  %v629_v22 = vrot.slane %v5107_v40, 4  ;;  %v5151_v23 = vld [vmem:[#allocation2 + $0x5b] ss:$2 sm:$0x7]  ;;  %v4660_v14 = vld [vmem:[%s6019_s1 + $0xa8] sm:$0xff]  }
 0x127   :  { %389 = vst.msk [vmem:[#allocation2 + $0x78] sm:$0xff] %vm373_vm0, %v372_v45  ;;  %v5162_v33 = vrot.slane %v5124_v32, 1  ;;  %v5164_v39 = vld [vmem:[#allocation2 + $0x69] ss:$2 sm:$0x7]  ;;  %v1736_v29 = vrot.slane %v5111_v38, 2  ;;  %v636_v31 = vsel %vm425_vm3, %v623_v1, %v626_v46  ;;  %v1555_v38 = vsel %vm425_vm3, %v1544_v8, %v1546_v57 }
 0x128   :  { %4374 = vmatprep.mubr.msk.bf16.mxu1 %vm373_vm0, %v469_v56  ;;  %v1928_v45 = vrot.slane %v5113_v44, 2  ;;  %v1738_v56 = vrot.slane %v5143_v4, 7  ;;  %v736_v44 = vrot.slane %v5105_v30, 4  ;;  %v1556_v21 = vsel %vm427_vm4, %v1555_v38, %v1548_v16  ;;  %v5186_v55 = vld [vmem:[#allocation2 + $0x6b] ss:$2 sm:$0x7] }
 0x129   :  { %4375 = vmatmul.mubr.msk.bf16.vlgmr.msra.gmra.mxu1 %vm373_vm0, %v470_v3  ;;  %v637_v1 = vsel %vm427_vm4, %v636_v31, %v629_v22  ;;  %v1740_v46 = vrot.slane %v5164_v39, 4  ;;  %v1356_v50 = vrot.slane %v5080_v11, 4  ;;  %v4662_v16 = vld [vmem:[%s6019_s1 + $0xa0] sm:$0xff]   ;;  %v5196_v38 = vld [vmem:[#allocation2 + $0x58] ss:$2 sm:$0x7]  ;;  %v1746_v62 = vsel %vm423_vm2, %v1745_v9, %v1736_v29 }
 0x12a   :  { %4379 = vmatpush3.bf16.msra.mxu1 %v4943_v34  ;;  %4382 = vmatprep.mubr.msk.bf16.mxu1 %vm373_vm0, %v431_v15  ;;  %v1540_v54 = vld [vmem:[#allocation2 + $0x73] ss:$2 sm:$0x7]  ;;  %v1450_v34 = vrot.slane %v5107_v40, 7  ;;  %v638_v30 = vsel %vm429_vm5, %v637_v1, %v5162_v33  ;;  %v1747_v11 = vsel %vm425_vm3, %v1736_v29, %v1738_v56  ;;  %v432_v52 = vpack.c.bf16 %v5096_v24, %v5096_v24 }
 0x12b   :  { %4380 = vmatprep.subr.bf16.mxu1 %v4658_v6  ;;  %v1551_v25 = vrot.slane %v1540_v54, 1  ;;  %v5181_v15 = vld [vmem:[#allocation2 + $0x1b] ss:$2 sm:$0x7]  ;;  %v1930_v54 = vrot.slane %v5151_v23, 7  ;;  %v1932_v9 = vrot.slane %v5186_v55, 4  ;;  %v639_v56 = vpack.c.bf16 %v638_v30, %v5129_v61 }
 0x12c   :  { %v1348_v22 = vld [vmem:[#allocation2 + $0x71] ss:$2 sm:$0x7]  ;;  %v1937_v1 = vsel %vm421_vm1, %v5181_v15, %v1925_v12  ;;  %v5213_v29 = vld [vmem:[#allocation2 + $0x5a] ss:$2 sm:$0x7]  ;;  %v1748_v12 = vsel %vm427_vm4, %v1747_v11, %v1740_v46  ;;  %v743_v24 = vsel %vm425_vm3, %v730_v2, %v733_v58  ;;  %v640_v40 = vpack.c.bf16 %v5162_v33, %v5162_v33 }
 0x12d   :  { %v1557_v8 = vsel %vm429_vm5, %v1556_v21, %v1551_v25  ;;  %v1559_v57 = vpack.c.bf16 %v1551_v25, %v1551_v25  ;;  %v4663_v25 = vld [vmem:[%s6019_s1 + $0x150] sm:$0xff]   ;;  %v744_v61 = vsel %vm427_vm4, %v743_v24, %v736_v44  ;;  %v5233_v18 = vrot.slane %v1348_v22, 1  ;;  %v4664_v44 = vld [vmem:[%s6019_s1 + $0xb8] sm:$0xff]  }
 0x12e   :  { %4381 = vmatpush3.bf16.msra.mxu1 %v4658_v6  ;;  %v1558_v31 = vpack.c.bf16 %v1557_v8, %v1554_v10  ;;  %v1732_v3 = vld [vmem:[#allocation2 + $0x79] ss:$2 sm:$0x7]  ;;  %v5210_v6 = vrot.slane %v5118_v42, 1  ;;  %v1452_v58 = vrot.slane %v5124_v32, 4  ;;  %v1834_v32 = vrot.slane %v5213_v29, 7 }
 0x12f   :  { %v1924_v21 = vld [vmem:[#allocation2 + $0x7b] ss:$2 sm:$0x7]  ;;  %4386 = vmatprep.subr.bf16.mxu1 %v4660_v14  ;;  %v5207_v51 = vrot.slane %v1732_v3, 1  ;;  %v5222_v3 = vsel %vm423_vm2, %v1937_v1, %v1928_v45  ;;  %v6026_v24 = vrot.slane %v4998_v41, 2  ;;  %v843_v41 = vrot.slane %v5196_v38, 4 }
 0x130   :  { %v832_v10 = vld [vmem:[#allocation2 + $0x68] ss:$2 sm:$0x7]  ;;  %4462 = vmatprep.mubr.msk.bf16.mxu0 %vm373_vm0, %v1558_v31  ;;  %v1444_v8 = vld [vmem:[#allocation2 + $0x72] ss:$2 sm:$0x7]  ;;  %v745_v22 = vsel %vm429_vm5, %v744_v61, %v5210_v6 }
 0x131   :  { %v5224_v42 = vld [vmem:[#allocation2 + $0x6a] ss:$2 sm:$0x7]  ;;  %4383 = vmatmul.mubr.msk.bf16.vlgmr.msra.gmra.mxu1 %vm373_vm0, %v432_v52  ;;  %4463 = vmatmul.mubr.msk.bf16.vlgmr.msra.gmra.mxu0 %vm373_vm0, %v1559_v57  ;;  %v1749_v31 = vsel %vm429_vm5, %v1748_v12, %v5207_v51  ;;  %v5231_v46 = vrot.slane %v1924_v21, 1  ;;  %v1939_v52 = vsel %vm425_vm3, %v1928_v45, %v1930_v54  ;;  %v1642_v57 = vrot.slane %v5196_v38, 7  ;;  %v4672_v45 = vld [vmem:[%s6019_s1 + $0x178] sm:$0xff]  }
 0x132   :  { %v1636_v2 = vld [vmem:[#allocation2 + $0x78] ss:$2 sm:$0x7]  ;;  %4387 = vmatpush3.bf16.msra.mxu1 %v4660_v14  ;;  %4390 = vmatprep.mubr.msk.bf16.mxu1 %vm373_vm0, %v639_v56  ;;  %v1750_v30 = vpack.c.bf16 %v1749_v31, %v1746_v62  ;;  %v1940_v14 = vsel %vm427_vm4, %v1939_v52, %v1932_v9  ;;  %v1644_v11 = vrot.slane %v832_v10, 4  ;;  %v5246_v21 = vrot.slane %v1444_v8, 1  ;;  %v4674_v52 = vld [vmem:[%s6019_s1 + $0x170] sm:$0xff]  }
 0x133   :  { %4475 = vmatpush3.bf16.msra.mxu0 %v4955_v37  ;;  %4388 = vmatprep.subr.bf16.mxu1 %v4662_v16  ;;  %v1828_v62 = vld [vmem:[#allocation2 + $0x7a] ss:$2 sm:$0x7]  ;;  %v1836_v37 = vrot.slane %v5224_v42, 4  ;;  %v1364_v54 = vsel %vm427_vm4, %v5090_v19, %v1356_v50  ;;  %v5256_v1 = vrot.slane %v1636_v2, 1  ;;  %v1751_v9 = vpack.c.bf16 %v5207_v51, %v5207_v51 }
 0x134   :  { %4478 = vmatprep.mubr.msk.bf16.mxu0 %vm373_vm0, %v1750_v30  ;;  %4476 = vmatprep.subr.bf16.mxu0 %v4663_v25  ;;  %v1941_v56 = vsel %vm429_vm5, %v1940_v14, %v5231_v46  ;;  %v5264_v12 = vsel %vm429_vm5, %v1364_v54, %v5233_v18  ;;  %v1459_v8 = vsel %vm425_vm3, %v6026_v24, %v1450_v34  ;;  %v6027_v51 = vrot.slane %v5015_v49, 2  ;;  %v4665_v49 = vld [vmem:[%s6019_s1 + $0xb0] sm:$0xff]  }
 0x135   :  { %v1366_v19 = vpack.c.bf16 %v5264_v12, %v5013_v48  ;;  %v1460_v50 = vsel %vm427_vm4, %v1459_v8, %v1452_v58  ;;  %v5277_v61 = vrot.slane %v1828_v62, 1  ;;  %v746_v2 = vpack.c.bf16 %v745_v22, %v5134_v63  ;;  %v4667_v8 = vld [vmem:[%s6019_s1 + $0xc0] sm:$0xff]   ;;  %v4682_v48 = vld [vmem:[%s6019_s1 + $0x148] sm:$0xff]  }
 0x136   :  { %4389 = vmatpush3.bf16.msra.mxu1 %v4662_v16  ;;  %v1651_v31 = vsel %vm425_vm3, %v6027_v51, %v1642_v57  ;;  %v5284_v34 = vsel %vm429_vm5, %v1460_v50, %v5246_v21  ;;  %v6028_v38 = vrot.slane %v5019_v53, 2  ;;  %v1942_v63 = vpack.c.bf16 %v1941_v56, %v5222_v3  ;;  %v4683_v12 = vld [vmem:[%s6019_s1 + $0x140] sm:$0xff]  }
 0x137   :  { %4477 = vmatpush3.bf16.msra.mxu0 %v4663_v25  ;;  %4394 = vmatprep.subr.bf16.mxu1 %v4664_v44  ;;  %v1652_v16 = vsel %vm427_vm4, %v1651_v31, %v1644_v11  ;;  %v1462_v25 = vpack.c.bf16 %v5284_v34, %v5027_v59  ;;  %v846_v30 = vrot.slane %v832_v10, 1  ;;  %v834_v53 = vrot.slane %v5008_v47, 5  ;;  %v4666_v10 = vld [vmem:[%s6019_s1 + $0xc8] sm:$0xff]   ;;  %v4687_v34 = vld [vmem:[%s6019_s1 + $0x198] sm:$0xff]  }
 0x138   :  { %4490 = vmatprep.subr.bf16.mxu0 %v4672_v45  ;;  %v5295_v33 = vsel %vm429_vm5, %v1652_v16, %v5256_v1  ;;  %v1843_v58 = vsel %vm425_vm3, %v6028_v38, %v1834_v32  ;;  %v6029_v3 = vrot.slane %v5136_v20, 7  ;;  %v935_v32 = vld [vmem:[#allocation2 + $0x49] ss:$2 sm:$0x7]  ;;  %v747_v20 = vpack.c.bf16 %v5210_v6, %v5210_v6  ;;  %v4669_v38 = vld [vmem:[%s6019_s1 + $0xd0] sm:$0xff]  }
 0x139   :  { %4391 = vmatmul.mubr.msk.bf16.vlgmr.msra.gmra.mxu1 %vm373_vm0, %v640_v40  ;;  %v1654_v57 = vpack.c.bf16 %v5295_v33, %v5032_v60  ;;  %v1844_v22 = vsel %vm427_vm4, %v1843_v58, %v1836_v37  ;;  %v822_v37 = vld [vmem:[#allocation2 + $0x8] ss:$2 sm:$0x7]  ;;  %v1943_v50 = vpack.c.bf16 %v5231_v46, %v5231_v46  ;;  %v950_v31 = vrot.slane %v5143_v4, 4  ;;  %v4668_v46 = vld [vmem:[%s6019_s1 + $0xd8] sm:$0xff]  }
 0x13a   :  { %4395 = vmatpush3.bf16.msra.mxu1 %v4664_v44  ;;  %4479 = vmatmul.mubr.msk.bf16.vlgmr.msra.gmra.mxu0 %vm373_vm0, %v1751_v9  ;;  %v5312_v14 = vsel %vm429_vm5, %v1844_v22, %v5277_v61  ;;  %v6030_v44 = vrot.slane %v4986_v28, 2  ;;  %v848_v9 = vsel %vm421_vm1, %v822_v37, %v834_v53  ;;  %v944_v6 = vrot.slane %v5061_v27, 2  ;;  %v1042_v16 = vld [vmem:[#allocation2 + $0x4a] ss:$2 sm:$0x7] }
 0x13b   :  { %4398 = vmatprep.mubr.msk.bf16.mxu1 %vm373_vm0, %v746_v2  ;;  %4494 = vmatprep.mubr.msk.bf16.mxu0 %vm373_vm0, %v1942_v63  ;;  %v1846_v47 = vpack.c.bf16 %v5312_v14, %v5048_v7  ;;  %v953_v28 = vrot.slane %v5164_v39, 1  ;;  %v941_v40 = vrot.slane %v5109_v36, 5  ;;  %v929_v27 = vld [vmem:[#allocation2 + $0x9] ss:$2 sm:$0x7]  ;;  %v854_v2 = vpack.c.bf16 %v846_v30, %v846_v30  ;;  %v4688_v7 = vld [vmem:[%s6019_s1 + $0x1b0] sm:$0xff]  }
 0x13c   :  { %v850_v11 = vsel %vm425_vm3, %v6030_v44, %v6029_v3  ;;  %4396 = vmatprep.subr.bf16.mxu1 %v4665_v49  ;;  %4491 = vmatpush3.bf16.msra.mxu0 %v4672_v45  ;;  %v6031_v56 = vmov %v6030_v44  ;;  %v947_v45 = vrot.slane %v935_v32, 7  ;;  %v1054_v58 = vrot.slane %v1042_v16, 7  ;;  %v1149_v44 = vld [vmem:[#allocation2 + $0x4b] ss:$2 sm:$0x7]  ;;  %v4671_v32 = vld [vmem:[%s6019_s1 + $0xe0] sm:$0xff]  }
 0x13d   :  { %v851_v62 = vsel %vm427_vm4, %v850_v11, %v843_v41  ;;  %4492 = vmatprep.subr.bf16.mxu0 %v4674_v52  ;;  %v849_v24 = vsel %vm423_vm2, %v848_v9, %v6031_v56  ;;  %v955_v36 = vsel %vm421_vm1, %v929_v27, %v941_v40  ;;  %v1051_v22 = vrot.slane %v5000_v43, 2  ;;  %v1036_v11 = vld [vmem:[#allocation2 + $0xa] ss:$2 sm:$0x7]  ;;  %v4675_v40 = vld [vmem:[%s6019_s1 + $0xf0] sm:$0xff]   ;;  %v4692_v14 = vld [vmem:[%s6019_s1 + $0x1a0] sm:$0xff]  }
 0x13e   :  { %v852_v54 = vsel %vm429_vm5, %v851_v62, %v846_v30  ;;  %4397 = vmatpush3.bf16.msra.mxu1 %v4665_v49  ;;  %v957_v41 = vsel %vm425_vm3, %v944_v6, %v947_v45  ;;  %v956_v49 = vsel %vm423_vm2, %v955_v36, %v944_v6  ;;  %v1060_v53 = vrot.slane %v5224_v42, 1  ;;  %v4684_v59 = vld [vmem:[%s6019_s1 + $0x168] sm:$0xff]  }
 0x13f   :  { %4402 = vmatprep.subr.bf16.mxu1 %v4666_v10  ;;  %v853_v51 = vpack.c.bf16 %v852_v54, %v849_v24  ;;  %v958_v4 = vsel %vm427_vm4, %v957_v41, %v950_v31  ;;  %v1048_v30 = vrot.slane %v5037_v0, 5  ;;  %v1064_v3 = vsel %vm425_vm3, %v1051_v22, %v1054_v58  ;;  %v4690_v33 = vld [vmem:[%s6019_s1 + $0x1a8] sm:$0xff]  }
 0x140   :  { %4493 = vmatpush3.bf16.msra.mxu0 %v4674_v52  ;;  %v959_v39 = vsel %vm429_vm5, %v958_v4, %v953_v28  ;;  %v1057_v52 = vrot.slane %v5213_v29, 4  ;;  %v961_v62 = vpack.c.bf16 %v953_v28, %v953_v28  ;;  %v1161_v37 = vrot.slane %v1149_v44, 7 }
 0x141   :  { %4399 = vmatmul.mubr.msk.bf16.vlgmr.msra.gmra.mxu1 %vm373_vm0, %v747_v20  ;;  %v960_v63 = vpack.c.bf16 %v959_v39, %v956_v49  ;;  %v1062_v42 = vsel %vm421_vm1, %v1036_v11, %v1048_v30  ;;  %v1164_v9 = vrot.slane %v5151_v23, 4  ;;  %v1158_v20 = vrot.slane %v5099_v26, 2  ;;  %v4681_v30 = vld [vmem:[%s6019_s1 + $0x120] sm:$0xff]  }
 0x142   :  { %4403 = vmatpush3.bf16.msra.mxu1 %v4666_v10  ;;  %4406 = vmatprep.mubr.msk.bf16.mxu1 %vm373_vm0, %v853_v51  ;;  %v4670_v10 = vld [vmem:[%s6019_s1 + $0xe8] sm:$0xff]   ;;  %v1065_v29 = vsel %vm427_vm4, %v1064_v3, %v1057_v52  ;;  %v1063_v0 = vsel %vm423_vm2, %v1062_v42, %v1051_v22  ;;  %v1167_v56 = vrot.slane %v5186_v55, 1  ;;  %v1155_v24 = vrot.slane %v5181_v15, 5  ;;  %v1250_v55 = vld [vmem:[#allocation2 + $0x30] ss:$2 sm:$0x7] }
 0x143   :  { %4404 = vmatprep.subr.bf16.mxu1 %v4667_v8  ;;  %4495 = vmatmul.mubr.msk.bf16.vlgmr.msra.gmra.mxu0 %vm373_vm0, %v1943_v50  ;;  %v1066_v43 = vsel %vm429_vm5, %v1065_v29, %v1060_v53  ;;  %v1171_v45 = vsel %vm425_vm3, %v1158_v20, %v1161_v37  ;;  %v1143_v50 = vld [vmem:[#allocation2 + $0xb] ss:$2 sm:$0x7]  ;;  %v1252_v15 = vld [vmem:[#allocation2 + $0x70] ss:$2 sm:$0x7]  ;;  %v1068_v6 = vpack.c.bf16 %v1060_v53, %v1060_v53 }
 0x144   :  { %v1067_v54 = vpack.c.bf16 %v1066_v43, %v1063_v0  ;;  %v1172_v23 = vsel %vm427_vm4, %v1171_v45, %v1164_v9  ;;  %v1169_v26 = vsel %vm421_vm1, %v1143_v50, %v1155_v24  ;;  %v1258_v31 = vrot.slane %v5064_v35, 7  ;;  %v4676_v35 = vld [vmem:[%s6019_s1 + $0x108] sm:$0xff]   ;;  %v4679_v52 = vld [vmem:[%s6019_s1 + $0x110] sm:$0xff]  }
 0x145   :  { %v1173_v51 = vsel %vm429_vm5, %v1172_v23, %v1167_v56  ;;  %v1170_v28 = vsel %vm423_vm2, %v1169_v26, %v1158_v20  ;;  %v1256_v4 = vrot.slane %v1250_v55, 2  ;;  %v1263_v16 = vrot.slane %v1252_v15, 1  ;;  %v4680_v22 = vld [vmem:[%s6019_s1 + $0x128] sm:$0xff]  }
 0x146   :  { %4405 = vmatpush3.bf16.msra.mxu1 %v4667_v8  ;;  %v4673_v8 = vld [vmem:[%s6019_s1 + $0xf8] sm:$0xff]   ;;  %v1174_v41 = vpack.c.bf16 %v1173_v51, %v1170_v28  ;;  %v1253_v27 = vrot.slane %v5055_v17, 5  ;;  %v1175_v17 = vpack.c.bf16 %v1167_v56, %v1167_v56  ;;  %v1367_v53 = vpack.c.bf16 %v5233_v18, %v5233_v18 }
 0x147   :  { %4410 = vmatprep.subr.bf16.mxu1 %v4668_v46  ;;  %v1267_v39 = vsel %vm425_vm3, %v1256_v4, %v1258_v31  ;;  %v1463_v18 = vpack.c.bf16 %v5246_v21, %v5246_v21  ;;  %v1655_v21 = vpack.c.bf16 %v5256_v1, %v5256_v1  ;;  %v1847_v60 = vpack.c.bf16 %v5277_v61, %v5277_v61  ;;  %v4686_v1 = vld [vmem:[%s6019_s1 + $0x1b8] sm:$0xff]   ;;  %v4689_v61 = vld [vmem:[%s6019_s1 + $0x190] sm:$0xff]  }
 0x149   :  { %4407 = vmatmul.mubr.msk.bf16.vlgmr.msra.gmra.mxu1 %vm373_vm0, %v854_v2  ;;  %v1265_v2 = vsel %vm421_vm1, %v5041_v5, %v1253_v27  ;;  %v1271_v5 = vpack.c.bf16 %v1263_v16, %v1263_v16 }
 0x14a   :  { %4411 = vmatpush3.bf16.msra.mxu1 %v4668_v46  ;;  %4414 = vmatprep.mubr.msk.bf16.mxu1 %vm373_vm0, %v960_v63  ;;  %v1260_v46 = vrot.slane %v5083_v13, 4  ;;  %v1266_v49 = vsel %vm423_vm2, %v1265_v2, %v1256_v4  ;;  %v4678_v63 = vld [vmem:[%s6019_s1 + $0x118] sm:$0xff]  }
 0x14b   :  { %4412 = vmatprep.subr.bf16.mxu1 %v4669_v38 }
 0x14c   :  { %v1268_v36 = vsel %vm427_vm4, %v1267_v39, %v1260_v46 }
 0x14d   :  { %v1269_v13 = vsel %vm429_vm5, %v1268_v36, %v1263_v16 }
 0x14e   :  { %4413 = vmatpush3.bf16.msra.mxu1 %v4669_v38  ;;  %v4677_v38 = vld [vmem:[%s6019_s1 + $0x100] sm:$0xff]   ;;  %v1270_v58 = vpack.c.bf16 %v1269_v13, %v1266_v49 }
 0x14f   :  { %4418 = vmatprep.subr.bf16.mxu1 %v4670_v10 }
 0x151   :  { %4415 = vmatmul.mubr.msk.bf16.vlgmr.msra.gmra.mxu1 %vm373_vm0, %v961_v62 }
 0x152   :  { %4419 = vmatpush3.bf16.msra.mxu1 %v4670_v10  ;;  %4422 = vmatprep.mubr.msk.bf16.mxu1 %vm373_vm0, %v1067_v54 }
 0x153   :  { %4420 = vmatprep.subr.bf16.mxu1 %v4671_v32 }
 0x156   :  { %4421 = vmatpush3.bf16.msra.mxu1 %v4671_v32 }
 0x157   :  { %4426 = vmatprep.subr.bf16.mxu1 %v4673_v8 }
 0x159   :  { %4423 = vmatmul.mubr.msk.bf16.vlgmr.msra.gmra.mxu1 %vm373_vm0, %v1068_v6 }
 0x15a   :  { %4427 = vmatpush3.bf16.msra.mxu1 %v4673_v8  ;;  %4430 = vmatprep.mubr.msk.bf16.mxu1 %vm373_vm0, %v1174_v41 }
 0x15b   :  { %4428 = vmatprep.subr.bf16.mxu1 %v4675_v40 }
 0x15e   :  { %4429 = vmatpush3.bf16.msra.mxu1 %v4675_v40 }
 0x15f   :  { %4434 = vmatprep.subr.bf16.mxu1 %v4676_v35 }
 0x161   :  { %4431 = vmatmul.mubr.msk.bf16.vlgmr.msra.gmra.mxu1 %vm373_vm0, %v1175_v17 }
 0x162   :  { %4435 = vmatpush3.bf16.msra.mxu1 %v4676_v35  ;;  %4438 = vmatprep.mubr.msk.bf16.mxu1 %vm373_vm0, %v1270_v58 }
 0x163   :  { %4436 = vmatprep.subr.bf16.mxu1 %v4677_v38 }
 0x166   :  { %4437 = vmatpush3.bf16.msra.mxu1 %v4677_v38 }
 0x167   :  { %4442 = vmatprep.subr.bf16.mxu1 %v4678_v63 }
 0x169   :  { %4439 = vmatmul.mubr.msk.bf16.vlgmr.msra.gmra.mxu1 %vm373_vm0, %v1271_v5 }
 0x16a   :  { %4443 = vmatpush3.bf16.msra.mxu1 %v4678_v63  ;;  %4446 = vmatprep.mubr.msk.bf16.mxu1 %vm373_vm0, %v1366_v19  ;;  %v4685_v19 = vld [vmem:[%s6019_s1 + $0x160] sm:$0xff]  }
 0x16b   :  { %4444 = vmatprep.subr.bf16.mxu1 %v4679_v52 }
 0x16e   :  { %4445 = vmatpush3.bf16.msra.mxu1 %v4679_v52 }
 0x16f   :  { %4450 = vmatprep.subr.bf16.mxu1 %v4680_v22 }
 0x171   :  { %4447 = vmatmul.mubr.msk.bf16.vlgmr.msra.gmra.mxu1 %vm373_vm0, %v1367_v53 }
 0x172   :  { %4451 = vmatpush3.bf16.msra.mxu1 %v4680_v22  ;;  %4454 = vmatprep.mubr.msk.bf16.mxu1 %vm373_vm0, %v1462_v25  ;;  %v4808_v25 = vmov 0.0  }
 0x173   :  { %4452 = vmatprep.subr.bf16.mxu1 %v4681_v30  ;;  %4510 = vmatprep.subr.bf16.mxu0 %v4808_v25 }
 0x174   :  { %4511 = vmatpush3.bf16.msra.mxu0 %v4687_v34  ;;  %4518 = vmatprep.mubr.msk.bf16.mxu0 %vm4809_vm6, %v4808_v25 }
 0x175   :  { %4512 = vmatprep.subr.bf16.mxu0 %v4808_v25 }
 0x176   :  { %4453 = vmatpush3.bf16.msra.mxu1 %v4681_v30 }
 0x177   :  { %4466 = vmatprep.subr.bf16.mxu1 %v4682_v48 }
 0x178   :  { %4513 = vmatpush3.bf16.msra.mxu0 %v4689_v61 }
 0x179   :  { %4455 = vmatmul.mubr.msk.bf16.vlgmr.msra.gmra.mxu1 %vm373_vm0, %v1463_v18  ;;  %4514 = vmatprep.subr.bf16.mxu0 %v4808_v25 }
 0x17a   :  { %4467 = vmatpush3.bf16.msra.mxu1 %v4682_v48  ;;  %4470 = vmatprep.mubr.msk.bf16.mxu1 %vm373_vm0, %v1654_v57  ;;  %v4691_v57 = vld [vmem:[%s6019_s1 + $0x188] sm:$0xff]  }
 0x17b   :  { %4468 = vmatprep.subr.bf16.mxu1 %v4683_v12 }
 0x17c   :  { %4515 = vmatpush3.bf16.msra.mxu0 %v4691_v57 }
 0x17d   :  { %4516 = vmatprep.subr.bf16.mxu0 %v4808_v25 }
 0x17e   :  { %4469 = vmatpush3.bf16.msra.mxu1 %v4683_v12 }
 0x17f   :  { %4482 = vmatprep.subr.bf16.mxu1 %v4684_v59 }
 0x181   :  { %4471 = vmatmul.mubr.msk.bf16.vlgmr.msra.gmra.mxu1 %vm373_vm0, %v1655_v21 }
 0x182   :  { %4483 = vmatpush3.bf16.msra.mxu1 %v4684_v59  ;;  %4486 = vmatprep.mubr.msk.bf16.mxu1 %vm373_vm0, %v1846_v47  ;;  %v4693_v47 = vld [vmem:[%s6019_s1 + $0x180] sm:$0xff]  }
 0x183   :  { %4484 = vmatprep.subr.bf16.mxu1 %v4685_v19  ;;  %4517 = vmatpush3.bf16.msra.mxu0 %v4693_v47 }
 0x184   :  { %4534 = vmatprep.subr.bf16.mxu0 %v4808_v25 }
 0x186   :  { %4485 = vmatpush3.bf16.msra.mxu1 %v4685_v19 }
 0x187   :  { %4498 = vmatprep.subr.bf16.mxu1 %v4808_v25 }
 0x189   :  { %4487 = vmatmul.mubr.msk.bf16.vlgmr.msra.gmra.mxu1 %vm373_vm0, %v1847_v60 }
 0x18a   :  { %4499 = vmatpush3.bf16.msra.mxu1 %v4686_v1  ;;  %4506 = vmatprep.mubr.msk.bf16.mxu1 %vm4809_vm6, %v4808_v25 }
 0x18b   :  { %4500 = vmatprep.subr.bf16.mxu1 %v4808_v25 }
 0x18e   :  { %4501 = vmatpush3.bf16.msra.mxu1 %v4688_v7 }
 0x18f   :  { %4502 = vmatprep.subr.bf16.mxu1 %v4808_v25 }
 0x192   :  { %4503 = vmatpush3.bf16.msra.mxu1 %v4690_v33 }
 0x193   :  { %4504 = vmatprep.subr.bf16.mxu1 %v4808_v25 }
 0x196   :  { %4505 = vmatpush3.bf16.msra.mxu1 %v4692_v14 }
 0x197   :  { %4522 = vmatprep.subr.bf16.mxu1 %v4808_v25 }
 0x1e9   :  { %v4376_v10 = vpop.f32.mrf.mxu1 }
 0x1eb   :  { %v523_v3 = vpop.f32.mrf.mxu1 }
 0x1ed   :  { %v4377_v29 = vpop.f32.mrf.mxu1 }
 0x1ef   :  { %v526_v44 = vpop.f32.mrf.mxu1 }
 0x1f1   :  { %v4384_v11 = vpop.f32.mrf.mxu1  ;;  %v5501_v43 = vpop.f32.mrf.mxu0 }
 0x1f2   :  { %v598_v22 = vadd.f32 %v4384_v11, %v4376_v10 }
 0x1f3   :  { %v589_v42 = vpop.f32.mrf.mxu1  ;;  %v5503_v62 = vpop.f32.mrf.mxu0 }
 0x1f4   :  { %v590_v30 = vadd.f32 %v589_v42, %v523_v3 }
 0x1f5   :  { %v4385_v0 = vpop.f32.mrf.mxu1  ;;  %v4465_v32 = vpop.f32.mrf.mxu0 }
 0x1f7   :  { %v592_v37 = vpop.f32.mrf.mxu1  ;;  %v5505_v54 = vpop.f32.mrf.mxu0 }
 0x1f8   :  { %v593_v19 = vadd.f32 %v592_v37, %v526_v44 }
 0x1f9   :  { %v4392_v9 = vpop.f32.mrf.mxu1 }
 0x1fa   :  { %v5507_v20 = vpop.f32.mrf.mxu0  ;;  %v709_v48 = vadd.f32 %v4392_v9, %v598_v22 }
 0x1fb   :  { %v693_v56 = vpop.f32.mrf.mxu1 }
 0x1fc   :  { %v5509_v24 = vpop.f32.mrf.mxu0  ;;  %v707_v12 = vadd.f32 %v693_v56, %v590_v30 }
 0x1fd   :  { %v4393_v8 = vpop.f32.mrf.mxu1 }
 0x1fe   :  { %v4481_v45 = vpop.f32.mrf.mxu0 }
 0x1ff   :  { %v696_v23 = vpop.f32.mrf.mxu1 }
 0x200   :  { %v5511_v50 = vpop.f32.mrf.mxu0  ;;  %v708_v7 = vadd.f32 %v696_v23, %v593_v19 }
 0x201   :  { %v4400_v51 = vpop.f32.mrf.mxu1 }
 0x202   :  { %v816_v59 = vadd.f32 %v4400_v51, %v709_v48 }
 0x203   :  { %v800_v26 = vpop.f32.mrf.mxu1  ;;  %v5513_v55 = vpop.f32.mrf.mxu0 }
 0x204   :  { %v814_v60 = vadd.f32 %v800_v26, %v707_v12 }
 0x205   :  { %v4401_v15 = vpop.f32.mrf.mxu1  ;;  %v5515_v31 = vpop.f32.mrf.mxu0 }
 0x207   :  { %v803_v6 = vpop.f32.mrf.mxu1  ;;  %v4497_v28 = vpop.f32.mrf.mxu0 }
 0x208   :  { %v815_v14 = vadd.f32 %v803_v6, %v708_v7 }
 0x209   :  { %v4408_v40 = vpop.f32.mrf.mxu1 }
 0x20a   :  { %v923_v1 = vadd.f32 %v4408_v40, %v816_v59 }
 0x20b   :  { %v907_v46 = vpop.f32.mrf.mxu1 }
 0x20c   :  { %v921_v61 = vadd.f32 %v907_v46, %v814_v60 }
 0x20d   :  { %v4409_v41 = vpop.f32.mrf.mxu1 }
 0x20f   :  { %v910_v4 = vpop.f32.mrf.mxu1 }
 0x210   :  { %v922_v10 = vadd.f32 %v910_v4, %v815_v14  ;;  %v4698_v14 = vld [vmem:[%s6019_s1 + $0x1c8] sm:$0xff]  }
 0x211   :  { %v4416_v16 = vpop.f32.mrf.mxu1 }
 0x212   :  { %v1030_v33 = vadd.f32 %v4416_v16, %v923_v1 }
 0x213   :  { %v1014_v27 = vpop.f32.mrf.mxu1 }
 0x214   :  { %v1028_v47 = vadd.f32 %v1014_v27, %v921_v61 }
 0x215   :  { %v4417_v35 = vpop.f32.mrf.mxu1 }
 0x217   :  { %v1017_v39 = vpop.f32.mrf.mxu1 }
 0x218   :  { %v1029_v32 = vadd.f32 %v1017_v39, %v922_v10 }
 0x219   :  { %v4424_v36 = vpop.f32.mrf.mxu1 }
 0x21a   :  { %v1137_v29 = vadd.f32 %v4424_v36, %v1030_v33  ;;  %v4696_v33 = vld [vmem:[%s6019_s1 + $0x1d0] sm:$0xff]  }
 0x21b   :  { %v1121_v13 = vpop.f32.mrf.mxu1 }
 0x21c   :  { %v1135_v11 = vadd.f32 %v1121_v13, %v1028_v47  ;;  %v4699_v47 = vld [vmem:[%s6019_s1 + $0x1e8] sm:$0xff]  }
 0x21d   :  { %v4425_v2 = vpop.f32.mrf.mxu1 }
 0x21f   :  { %v1124_v17 = vpop.f32.mrf.mxu1 }
 0x220   :  { %v1136_v44 = vadd.f32 %v1124_v17, %v1029_v32 }
 0x221   :  { %v4432_v49 = vpop.f32.mrf.mxu1 }
 0x222   :  { %v1244_v3 = vadd.f32 %v4432_v49, %v1137_v29  ;;  %v4700_v29 = vld [vmem:[%s6019_s1 + $0x1c0] sm:$0xff]  }
 0x223   :  { %v1228_v38 = vpop.f32.mrf.mxu1 }
 0x224   :  { %v1242_v9 = vadd.f32 %v1228_v38, %v1135_v11 }
 0x225   :  { %v4433_v58 = vpop.f32.mrf.mxu1 }
 0x227   :  { %v1231_v63 = vpop.f32.mrf.mxu1 }
 0x228   :  { %v1243_v23 = vadd.f32 %v1231_v63, %v1136_v44  ;;  %v4706_v44 = vld [vmem:[%s6019_s1 + $0x208] sm:$0xff]  }
 0x229   :  { %v4440_v5 = vpop.f32.mrf.mxu1 }
 0x22a   :  { %v1340_v56 = vadd.f32 %v4440_v5, %v1244_v3  ;;  %v4702_v3 = vld [vmem:[%s6019_s1 + $0x218] sm:$0xff]  }
 0x22b   :  { %v1324_v52 = vpop.f32.mrf.mxu1 }
 0x22c   :  { %v1338_v37 = vadd.f32 %v1324_v52, %v1242_v9 }
 0x22d   :  { %v4441_v53 = vpop.f32.mrf.mxu1 }
 0x22f   :  { %v1327_v18 = vpop.f32.mrf.mxu1 }
 0x230   :  { %v1339_v6 = vadd.f32 %v1327_v18, %v1243_v23 }
 0x231   :  { %v4448_v21 = vpop.f32.mrf.mxu1 }
 0x232   :  { %v1436_v45 = vadd.f32 %v4448_v21, %v1340_v56  ;;  %v4704_v56 = vld [vmem:[%s6019_s1 + $0x210] sm:$0xff]  }
 0x233   :  { %v1420_v34 = vpop.f32.mrf.mxu1 }
 0x234   :  { %v1434_v26 = vadd.f32 %v1420_v34, %v1338_v37  ;;  %v4707_v37 = vld [vmem:[%s6019_s1 + $0x228] sm:$0xff]  }
 0x235   :  { %v4449_v57 = vpop.f32.mrf.mxu1 }
 0x236   :  { %v4697_v57 = vld [vmem:[%s6019_s1 + $0x1f0] sm:$0xff]  }
 0x237   :  { %v1423_v0 = vpop.f32.mrf.mxu1 }
 0x238   :  { %v1435_v41 = vadd.f32 %v1423_v0, %v1339_v6  ;;  %v4701_v0 = vld [vmem:[%s6019_s1 + $0x1e0] sm:$0xff]  }
 0x239   :  { %v4456_v42 = vpop.f32.mrf.mxu1 }
 0x23a   :  { %v1532_v15 = vadd.f32 %v4456_v42, %v1436_v45  ;;  %v4703_v42 = vld [vmem:[%s6019_s1 + $0x238] sm:$0xff]   ;;  %v4708_v45 = vld [vmem:[%s6019_s1 + $0x200] sm:$0xff]  }
 0x23b   :  { %v1516_v8 = vpop.f32.mrf.mxu1 }
 0x23c   :  { %v1530_v40 = vadd.f32 %v1516_v8, %v1434_v26  ;;  %v1628_v4 = vadd.f32 %v5501_v43, %v1532_v15  ;;  %v390_v43 = vld [vmem:[%s6021_s3 + $0x1] ss:$0 sm:$0xff]  ;;  %v4705_v8 = vld [vmem:[%s6019_s1 + $0x230] sm:$0xff]   ;;  %v4710_v15 = vld [vmem:[%s6019_s1 + $0x258] sm:$0xff]  }
 0x23d   :  { %v4457_v51 = vpop.f32.mrf.mxu1 }
 0x23e   :  { %v1626_v39 = vadd.f32 %v5503_v62, %v1530_v40  ;;  %v4709_v51 = vld [vmem:[%s6019_s1 + $0x220] sm:$0xff]  }
 0x23f   :  { %v1519_v28 = vpop.f32.mrf.mxu1 }
 0x240   :  { %v1531_v27 = vadd.f32 %v1519_v28, %v1435_v41  ;;  %v4711_v28 = vld [vmem:[%s6019_s1 + $0x278] sm:$0xff]   ;;  %v4713_v41 = vld [vmem:[%s6019_s1 + $0x270] sm:$0xff]  }
 0x241   :  { %v4472_v46 = vpop.f32.mrf.mxu1 }
 0x242   :  { %v1724_v35 = vadd.f32 %v4472_v46, %v1628_v4  ;;  %v1627_v17 = vadd.f32 %v5505_v54, %v1531_v27  ;;  %v4712_v46 = vld [vmem:[%s6019_s1 + $0x250] sm:$0xff]   ;;  %v4714_v4 = vld [vmem:[%s6019_s1 + $0x248] sm:$0xff]   ;;  %v4716_v27 = vld [vmem:[%s6019_s1 + $0x240] sm:$0xff]  }
 0x243   :  { %v1708_v16 = vpop.f32.mrf.mxu1 }
 0x244   :  { %v1722_v13 = vadd.f32 %v1708_v16, %v1626_v39  ;;  %v1820_v49 = vadd.f32 %v5507_v20, %v1724_v35  ;;  %v4715_v16 = vld [vmem:[%s6019_s1 + $0x268] sm:$0xff]   ;;  %v4717_v35 = vld [vmem:[%s6019_s1 + $0x260] sm:$0xff]  }
 0x245   :  { %v4473_v36 = vpop.f32.mrf.mxu1 }
 0x246   :  { %v1818_v5 = vadd.f32 %v5509_v24, %v1722_v13  ;;  %v1999_v24 = vpop.f32.mrf.mxu0  ;;  %v4718_v13 = vld [vmem:[%s6019_s1 + $0x298] sm:$0xff]  }
 0x247   :  { %v1711_v2 = vpop.f32.mrf.mxu1 }
 0x248   :  { %v1723_v58 = vadd.f32 %v1711_v2, %v1627_v17 }
 0x249   :  { %v4488_v38 = vpop.f32.mrf.mxu1 }
 0x24a   :  { %v1916_v63 = vadd.f32 %v4488_v38, %v1820_v49  ;;  %v1819_v54 = vadd.f32 %v5511_v50, %v1723_v58  ;;  %v4694_v50 = vld [vmem:[%s6019_s1 + $0x1d8] sm:$0xff]   ;;  %v4719_v49 = vld [vmem:[%s6019_s1 + $0x290] sm:$0xff]   ;;  %v4720_v38 = vld [vmem:[%s6019_s1 + $0x288] sm:$0xff]  }
 0x24b   :  { %v1900_v52 = vpop.f32.mrf.mxu1  ;;  %v4721_v58 = vld [vmem:[%s6019_s1 + $0x280] sm:$0xff]  }
 0x24c   :  { %v2012_v22 = vadd.f32 %v5513_v55, %v1916_v63  ;;  %v1914_v62 = vadd.f32 %v1900_v52, %v1818_v5  ;;  %v2769_v52 = vld [vmem:[%s6020_s2 + $0xe0] sm:$0xff] }
 0x24d   :  { %v4489_v53 = vpop.f32.mrf.mxu1 }
 0x24e   :  { %v2015_v30 = vadd.f32 %v2012_v22, %v390_v43  ;;  %v2010_v48 = vadd.f32 %v5515_v31, %v1914_v62  ;;  %v4695_v31 = vld [vmem:[%s6019_s1 + $0x1f8] sm:$0xff]   ;;  %v2766_v22 = vld [vmem:[%s6020_s2 + $0xc8] sm:$0xff] }
 0x24f   :  { %v1903_v20 = vpop.f32.mrf.mxu1 }
 0x250   :  { %v2018_v18 = vmax.f32 %v2015_v30, 0.0  ;;  %v2013_v12 = vadd.f32 %v2010_v48, %v390_v43  ;;  %v1915_v59 = vadd.f32 %v1903_v20, %v1819_v54  ;;  %v2757_v30 = vld [vmem:[%s6020_s2 + $0x80] sm:$0xff] }
 0x251   :  { %v2761_v48 = vld [vmem:[%s6020_s2 + $0xa0] sm:$0xff] }
 0x252   :  { %2023 = vst.msk [vmem:[#allocation3 + $0x10] sm:$0x3] %vm2022_vm7, %v2018_v18  ;;  %v2016_v21 = vmax.f32 %v2013_v12, 0.0  ;;  %v2011_v19 = vadd.f32 %v1999_v24, %v1915_v59  ;;  %v4026_v18 = vcombine.high %v2757_v30, %v2761_v48  ;;  %v2758_v12 = vld [vmem:[%s6020_s2 + $0x88] sm:$0xff] }
 0x253   :  { %v2762_v59 = vld [vmem:[%s6020_s2 + $0xa8] sm:$0xff] }
 0x254   :  { %2020 = vst.msk [vmem:[#allocation3] sm:$0xff] %vm2019_vm8, %v2016_v21  ;;  %v2014_v55 = vadd.f32 %v2011_v19, %v390_v43  ;;  %v2765_v43 = vld [vmem:[%s6020_s2 + $0xc0] sm:$0xff]  ;;  %v4028_v24 = vcombine.high %v2758_v12, %v2762_v59  ;;  %v4025_v21 = vcombine.low %v2757_v30, %v2761_v48  ;;  %v4027_v19 = vcombine.low %v2758_v12, %v2762_v59 }
 0x255   :  { %v4033_v62 = vcombine.low %v2765_v43, %v2769_v52  ;;  %v4034_v53 = vcombine.high %v2765_v43, %v2769_v52 }
 0x256   :  { %v2017_v60 = vmax.f32 %v2014_v55, 0.0  ;;  %v2749_v55 = vld [vmem:[%s6020_s2 + $0x40] sm:$0xff] }
 0x258   :  { %2021 = vst.msk [vmem:[#allocation3 + $0x8] sm:$0xff] %vm2019_vm8, %v2017_v60  ;;  %v2753_v60 = vld [vmem:[%s6020_s2 + $0x60] sm:$0xff] }
 0x25b   :  { %v2584_v36 = vld [vmem:[#allocation3 + $0x7] ss:$9 sm:$0x3] }
 0x25c   :  { %v2585_v17 = vpack.c.bf16 %v2584_v36, %v2584_v36 }
 0x25f   :  { %v2044_v1 = vld [vmem:[#allocation3 + $0x1] ss:$9 sm:$0x3]  ;;  %v2033_v34 = vld [vmem:[#allocation3] ss:$9 sm:$0x3] }
 0x260   :  { %v2045_v7 = vpack.c.bf16 %v2044_v1, %v2044_v1  ;;  %v2034_v61 = vpack.c.bf16 %v2033_v34, %v2033_v34  ;;  %v2189_v10 = vld [vmem:[#allocation3 + $0x2] ss:$9 sm:$0x3]  ;;  %v2268_v11 = vld [vmem:[#allocation3 + $0x3] ss:$9 sm:$0x3]  ;;  %v4018_v1 = vcombine.high %v2749_v55, %v2753_v60 }
 0x261   :  { %v2190_v32 = vpack.c.bf16 %v2189_v10, %v2189_v10  ;;  %v2269_v9 = vpack.c.bf16 %v2268_v11, %v2268_v11  ;;  %v2347_v23 = vld [vmem:[#allocation3 + $0x4] ss:$9 sm:$0x3]  ;;  %v2426_v26 = vld [vmem:[#allocation3 + $0x5] ss:$9 sm:$0x3] }
 0x262   :  { %4507 = vmatmul.mubr.msk.bf16.vlgmr.msra.gmra.mxu1 %vm2019_vm8, %v2045_v7  ;;  %4519 = vmatmul.mubr.msk.bf16.vlgmr.msra.gmra.mxu0 %vm2019_vm8, %v2034_v61  ;;  %v2348_v6 = vpack.c.bf16 %v2347_v23, %v2347_v23  ;;  %v2427_v40 = vpack.c.bf16 %v2426_v26, %v2426_v26  ;;  %v2505_v39 = vld [vmem:[#allocation3 + $0x6] ss:$9 sm:$0x3]  ;;  %v2663_v63 = vld [vmem:[#allocation3 + $0x8] ss:$9 sm:$0x3] }
 0x263   :  { %4523 = vmatpush3.bf16.msra.mxu1 %v4694_v50  ;;  %4535 = vmatpush3.bf16.msra.mxu0 %v4695_v31  ;;  %v2506_v2 = vpack.c.bf16 %v2505_v39, %v2505_v39  ;;  %v2664_v5 = vpack.c.bf16 %v2663_v63, %v2663_v63  ;;  %v2750_v50 = vld [vmem:[%s6020_s2 + $0x48] sm:$0xff]  ;;  %v4017_v31 = vcombine.low %v2749_v55, %v2753_v60  ;;  %v2741_v7 = vld [vmem:[%s6020_s2] sm:$0xff]  ;;  %v5716_v10 = vld [vmem:[%s6020_s2 + $0xd0] sm:$0xff] }
 0x264   :  { %4524 = vmatprep.subr.bf16.mxu1 %v4808_v25  ;;  %4536 = vmatprep.subr.bf16.mxu0 %v4808_v25  ;;  %v2754_v34 = vld [vmem:[%s6020_s2 + $0x68] sm:$0xff]  ;;  %v2745_v61 = vld [vmem:[%s6020_s2 + $0x20] sm:$0xff] }
 0x265   :  { %4530 = vmatprep.mubr.msk.bf16.mxu1 %vm4809_vm6, %v4808_v25  ;;  %4542 = vmatprep.mubr.msk.bf16.mxu0 %vm4809_vm6, %v4808_v25  ;;  %v2024_v55 = vld [vmem:[%s6021_s3 + $0x2] ss:$0 sm:$0xff] }
 0x267   :  { %4525 = vmatpush3.bf16.msra.mxu1 %v4696_v33  ;;  %4537 = vmatpush3.bf16.msra.mxu0 %v4697_v57  ;;  %v4810_v33 = vmov 0   ;;  %v4019_v57 = vcombine.low %v2750_v50, %v2754_v34 }
 0x268   :  { %4526 = vmatprep.subr.bf16.mxu1 %v4808_v25  ;;  %4538 = vmatprep.subr.bf16.mxu0 %v4808_v25 }
 0x26b   :  { %4527 = vmatpush3.bf16.msra.mxu1 %v4698_v14  ;;  %4539 = vmatpush3.bf16.msra.mxu0 %v4699_v47  ;;  %v4020_v14 = vcombine.high %v2750_v50, %v2754_v34  ;;  %v4010_v47 = vcombine.high %v2741_v7, %v2745_v61  ;;  %v2759_v34 = vld [vmem:[%s6020_s2 + $0x90] sm:$0xff] }
 0x26c   :  { %4528 = vmatprep.subr.bf16.mxu1 %v4808_v25  ;;  %4540 = vmatprep.subr.bf16.mxu0 %v4808_v25 }
 0x26f   :  { %4529 = vmatpush3.bf16.msra.mxu1 %v4700_v29  ;;  %4541 = vmatpush3.bf16.msra.mxu0 %v4701_v0  ;;  %v2742_v29 = vld [vmem:[%s6020_s2 + $0x8] sm:$0xff] }
 0x270   :  { %4546 = vmatprep.subr.bf16.mxu1 %v4808_v25  ;;  %4558 = vmatprep.subr.bf16.mxu0 %v4808_v25  ;;  %v2746_v0 = vld [vmem:[%s6020_s2 + $0x28] sm:$0xff] }
 0x271   :  { %v4012_v11 = vcombine.high %v2742_v29, %v2746_v0 }
 0x272   :  { %4531 = vmatmul.mubr.msk.bf16.vlgmr.msra.gmra.mxu1 %vm2019_vm8, %v2190_v32  ;;  %4543 = vmatmul.mubr.msk.bf16.vlgmr.msra.gmra.mxu0 %vm2019_vm8, %v2269_v9  ;;  %v5731_v32 = vld [vmem:[%s6020_s2 + $0xf8] sm:$0xff]  ;;  %v4009_v9 = vcombine.low %v2741_v7, %v2745_v61  ;;  %v2763_v61 = vld [vmem:[%s6020_s2 + $0xb0] sm:$0xff] }
 0x273   :  { %4547 = vmatpush3.bf16.msra.mxu1 %v4702_v3  ;;  %4559 = vmatpush3.bf16.msra.mxu0 %v4703_v42  ;;  %v5721_v3 = vld [vmem:[%s6020_s2 + $0xf0] sm:$0xff]  ;;  %v5726_v42 = vld [vmem:[%s6020_s2 + $0xd8] sm:$0xff] }
 0x274   :  { %4548 = vmatprep.subr.bf16.mxu1 %v4808_v25  ;;  %4560 = vmatprep.subr.bf16.mxu0 %v4808_v25 }
 0x275   :  { %4554 = vmatprep.mubr.msk.bf16.mxu1 %vm4809_vm6, %v4808_v25  ;;  %4566 = vmatprep.mubr.msk.bf16.mxu0 %vm4809_vm6, %v4808_v25 }
 0x277   :  { %4549 = vmatpush3.bf16.msra.mxu1 %v4704_v56  ;;  %4561 = vmatpush3.bf16.msra.mxu0 %v4705_v8  ;;  %v4037_v56 = vcombine.low %v5716_v10, %v5721_v3  ;;  %v4039_v8 = vcombine.low %v5726_v42, %v5731_v32 }
 0x278   :  { %4550 = vmatprep.subr.bf16.mxu1 %v4808_v25  ;;  %4562 = vmatprep.subr.bf16.mxu0 %v4808_v25 }
 0x27b   :  { %4551 = vmatpush3.bf16.msra.mxu1 %v4706_v44  ;;  %4563 = vmatpush3.bf16.msra.mxu0 %v4707_v37  ;;  %v4011_v44 = vcombine.low %v2742_v29, %v2746_v0  ;;  %v4038_v37 = vcombine.high %v5716_v10, %v5721_v3  ;;  %v2744_v10 = vld [vmem:[%s6020_s2 + $0x18] sm:$0xff] }
 0x27c   :  { %4552 = vmatprep.subr.bf16.mxu1 %v4808_v25  ;;  %4564 = vmatprep.subr.bf16.mxu0 %v4808_v25  ;;  %v2748_v3 = vld [vmem:[%s6020_s2 + $0x38] sm:$0xff] }
 0x27f   :  { %4553 = vmatpush3.bf16.msra.mxu1 %v4708_v45  ;;  %4565 = vmatpush3.bf16.msra.mxu0 %v4709_v51  ;;  %v4040_v45 = vcombine.high %v5726_v42, %v5731_v32 }
 0x280   :  { %4570 = vmatprep.subr.bf16.mxu1 %v4808_v25  ;;  %4582 = vmatprep.subr.bf16.mxu0 %v4808_v25 }
 0x282   :  { %4555 = vmatmul.mubr.msk.bf16.vlgmr.msra.gmra.mxu1 %vm2019_vm8, %v2348_v6  ;;  %4567 = vmatmul.mubr.msk.bf16.vlgmr.msra.gmra.mxu0 %vm2019_vm8, %v2427_v40 }
 0x283   :  { %4571 = vmatpush3.bf16.msra.mxu1 %v4710_v15  ;;  %4583 = vmatpush3.bf16.msra.mxu0 %v4711_v28 }
 0x284   :  { %4572 = vmatprep.subr.bf16.mxu1 %v4808_v25  ;;  %4584 = vmatprep.subr.bf16.mxu0 %v4808_v25 }
 0x285   :  { %4578 = vmatprep.mubr.msk.bf16.mxu1 %vm4809_vm6, %v4808_v25  ;;  %4590 = vmatprep.mubr.msk.bf16.mxu0 %vm4809_vm6, %v4808_v25 }
 0x287   :  { %4573 = vmatpush3.bf16.msra.mxu1 %v4712_v46  ;;  %4585 = vmatpush3.bf16.msra.mxu0 %v4713_v41 }
 0x288   :  { %4574 = vmatprep.subr.bf16.mxu1 %v4808_v25  ;;  %4586 = vmatprep.subr.bf16.mxu0 %v4808_v25 }
 0x28b   :  { %4575 = vmatpush3.bf16.msra.mxu1 %v4714_v4  ;;  %4587 = vmatpush3.bf16.msra.mxu0 %v4715_v16 }
 0x28c   :  { %4576 = vmatprep.subr.bf16.mxu1 %v4808_v25  ;;  %4588 = vmatprep.subr.bf16.mxu0 %v4808_v25 }
 0x28f   :  { %4577 = vmatpush3.bf16.msra.mxu1 %v4716_v27  ;;  %4589 = vmatpush3.bf16.msra.mxu0 %v4717_v35 }
 0x290   :  { %4594 = vmatprep.subr.bf16.mxu1 %v4808_v25  ;;  %2985 = vmatprep.subr.bf16.mxu0 %v4034_v53 }
 0x292   :  { %4579 = vmatmul.mubr.msk.bf16.vlgmr.msra.gmra.mxu1 %vm2019_vm8, %v2506_v2  ;;  %4591 = vmatmul.mubr.msk.bf16.vlgmr.msra.gmra.mxu0 %vm2019_vm8, %v2585_v17 }
 0x293   :  { %4595 = vmatpush3.bf16.msra.mxu1 %v4718_v13  ;;  %4602 = vmatprep.mubr.msk.bf16.mxu1 %vm4809_vm6, %v4808_v25 }
 0x294   :  { %4596 = vmatprep.subr.bf16.mxu1 %v4808_v25  ;;  %2986 = vmatpush1.bf16.msra.mxu0 %v4033_v62 }
 0x295   :  { %2987 = vmatprep.subr.bf16.mxu0 %v4026_v18  ;;  %3009 = vmatprep.mubr.bf16.mxu0 %v4810_v33 }
 0x297   :  { %4597 = vmatpush3.bf16.msra.mxu1 %v4719_v49 }
 0x298   :  { %4598 = vmatprep.subr.bf16.mxu1 %v4808_v25  ;;  %2988 = vmatpush1.bf16.msra.mxu0 %v4025_v21 }
 0x299   :  { %2989 = vmatprep.subr.bf16.mxu0 %v4018_v1 }
 0x29b   :  { %4599 = vmatpush3.bf16.msra.mxu1 %v4720_v38 }
 0x29c   :  { %4600 = vmatprep.subr.bf16.mxu1 %v4808_v25  ;;  %v2770_v25 = vld [vmem:[%s6020_s2 + $0xe8] sm:$0xff]  ;;  %2990 = vmatpush1.bf16.msra.mxu0 %v4017_v31 }
 0x29d   :  { %v4035_v54 = vcombine.low %v2766_v22, %v2770_v25  ;;  %v4036_v20 = vcombine.high %v2766_v22, %v2770_v25  ;;  %2991 = vmatprep.subr.bf16.mxu0 %v4010_v47 }
 0x29f   :  { %4601 = vmatpush3.bf16.msra.mxu1 %v4721_v58 }
 0x2a0   :  { %3026 = vmatprep.subr.bf16.mxu1 %v4036_v20  ;;  %2992 = vmatpush1.bf16.msra.mxu0 %v4009_v9 }
 0x2a1   :  { %3067 = vmatprep.subr.bf16.mxu0 %v4038_v37  ;;  %v2755_v37 = vld [vmem:[%s6020_s2 + $0x70] sm:$0xff] }
 0x2a2   :  { %4603 = vmatmul.mubr.msk.bf16.vlgmr.msra.gmra.mxu1 %vm2019_vm8, %v2664_v5 }
 0x2a3   :  { %3027 = vmatpush1.bf16.msra.mxu1 %v4035_v54  ;;  %3050 = vmatprep.mubr.bf16.mxu1 %v4810_v33 }
 0x2a4   :  { %3028 = vmatprep.subr.bf16.mxu1 %v4028_v24 }
 0x2a7   :  { %3029 = vmatpush1.bf16.msra.mxu1 %v4027_v19 }
 0x2a8   :  { %3030 = vmatprep.subr.bf16.mxu1 %v4020_v14  ;;  %v2764_v14 = vld [vmem:[%s6020_s2 + $0xb8] sm:$0xff] }
 0x2ab   :  { %3031 = vmatpush1.bf16.msra.mxu1 %v4019_v57  ;;  %v2760_v57 = vld [vmem:[%s6020_s2 + $0x98] sm:$0xff] }
 0x2ac   :  { %3032 = vmatprep.subr.bf16.mxu1 %v4012_v11  ;;  %v4030_v11 = vcombine.high %v2759_v34, %v2763_v61  ;;  %v4032_v9 = vcombine.high %v2760_v57, %v2764_v14 }
 0x2af   :  { %3033 = vmatpush1.bf16.msra.mxu1 %v4011_v44  ;;  %v2751_v44 = vld [vmem:[%s6020_s2 + $0x50] sm:$0xff] }
 0x2b0   :  { %3108 = vmatprep.subr.bf16.mxu1 %v4040_v45  ;;  %v2752_v45 = vld [vmem:[%s6020_s2 + $0x58] sm:$0xff]  ;;  %v4021_v42 = vcombine.low %v2751_v44, %v2755_v37 }
 0x322   :  { %v2107_v51 = vpop.f32.mrf.mxu1  ;;  %v2174_v23 = vpop.f32.mrf.mxu0 }
 0x323   :  { %v2175_v52 = vadd.f32 %v2174_v23, %v2107_v51  ;;  %v2756_v51 = vld [vmem:[%s6020_s2 + $0x78] sm:$0xff]  ;;  %v4029_v23 = vcombine.low %v2759_v34, %v2763_v61 }
 0x324   :  { %v4508_v26 = vpop.f32.mrf.mxu1  ;;  %v4520_v15 = vpop.f32.mrf.mxu0  ;;  %v4023_v32 = vcombine.low %v2752_v45, %v2756_v51  ;;  %v4007_v34 = vld [vmem:[%s6021_s3 + $0x3] ss:$8 sm:$0xf] }
 0x325   :  { %v4031_v26 = vcombine.low %v2760_v57, %v2764_v14  ;;  %v4022_v15 = vcombine.high %v2751_v44, %v2755_v37 }
 0x326   :  { %v2110_v28 = vpop.f32.mrf.mxu1  ;;  %v2177_v6 = vpop.f32.mrf.mxu0 }
 0x327   :  { %v4024_v28 = vcombine.high %v2752_v45, %v2756_v51  ;;  %v2743_v6 = vld [vmem:[%s6020_s2 + $0x10] sm:$0xff] }
 0x328   :  { %v4509_v40 = vpop.f32.mrf.mxu1  ;;  %v4521_v46 = vpop.f32.mrf.mxu0 }
 0x329   :  { %v2747_v40 = vld [vmem:[%s6020_s2 + $0x30] sm:$0xff] }
 0x32a   :  { %v4013_v46 = vcombine.low %v2743_v6, %v2747_v40 }
 0x332   :  { %v2252_v41 = vpop.f32.mrf.mxu1  ;;  %v2331_v4 = vpop.f32.mrf.mxu0 }
 0x333   :  { %v2258_v22 = vadd.f32 %v2252_v41, %v2175_v52  ;;  %v4015_v41 = vcombine.low %v2744_v10, %v2748_v3  ;;  %v4738_v52 = vld [vmem:[%s6019_s1 + $0x2f8] sm:$0xff]  }
 0x334   :  { %v4532_v16 = vpop.f32.mrf.mxu1  ;;  %v4544_v27 = vpop.f32.mrf.mxu0 }
 0x335   :  { %v2337_v48 = vadd.f32 %v2331_v4, %v2258_v22  ;;  %v4722_v4 = vld [vmem:[%s6019_s1 + $0x318] sm:$0xff]  }
 0x336   :  { %v2255_v35 = vpop.f32.mrf.mxu1  ;;  %v2334_v39 = vpop.f32.mrf.mxu0  ;;  %v4724_v16 = vld [vmem:[%s6019_s1 + $0x2d8] sm:$0xff]  }
 0x337   :  { %v4725_v27 = vld [vmem:[%s6019_s1 + $0x358] sm:$0xff]   ;;  %v4726_v35 = vld [vmem:[%s6019_s1 + $0x310] sm:$0xff]  }
 0x338   :  { %v4533_v36 = vpop.f32.mrf.mxu1  ;;  %v4545_v13 = vpop.f32.mrf.mxu0  ;;  %v4727_v39 = vld [vmem:[%s6019_s1 + $0x390] sm:$0xff]   ;;  %v4739_v22 = vld [vmem:[%s6019_s1 + $0x378] sm:$0xff]  }
 0x339   :  { %v4728_v36 = vld [vmem:[%s6019_s1 + $0x2d0] sm:$0xff]  }
 0x33a   :  { %v4729_v13 = vld [vmem:[%s6019_s1 + $0x350] sm:$0xff]  }
 0x342   :  { %v2410_v2 = vpop.f32.mrf.mxu1  ;;  %v2489_v17 = vpop.f32.mrf.mxu0 }
 0x343   :  { %v2416_v18 = vadd.f32 %v2410_v2, %v2337_v48  ;;  %v4730_v2 = vld [vmem:[%s6019_s1 + $0x308] sm:$0xff]   ;;  %v4744_v48 = vld [vmem:[%s6019_s1 + $0x2b0] sm:$0xff]  }
 0x344   :  { %v4556_v49 = vpop.f32.mrf.mxu1  ;;  %v4568_v38 = vpop.f32.mrf.mxu0 }
 0x345   :  { %v2495_v24 = vadd.f32 %v2489_v17, %v2416_v18  ;;  %v4731_v17 = vld [vmem:[%s6019_s1 + $0x388] sm:$0xff]  }
 0x346   :  { %v2413_v58 = vpop.f32.mrf.mxu1  ;;  %v2492_v63 = vpop.f32.mrf.mxu0  ;;  %v4732_v49 = vld [vmem:[%s6019_s1 + $0x2c8] sm:$0xff]  }
 0x347   :  { %v4733_v38 = vld [vmem:[%s6019_s1 + $0x348] sm:$0xff]   ;;  %v4734_v58 = vld [vmem:[%s6019_s1 + $0x300] sm:$0xff]  }
 0x348   :  { %v4557_v5 = vpop.f32.mrf.mxu1  ;;  %v4569_v43 = vpop.f32.mrf.mxu0  ;;  %v4735_v63 = vld [vmem:[%s6019_s1 + $0x380] sm:$0xff]   ;;  %v4747_v18 = vld [vmem:[%s6019_s1 + $0x368] sm:$0xff]  }
 0x349   :  { %v4736_v5 = vld [vmem:[%s6019_s1 + $0x2c0] sm:$0xff]  }
 0x34a   :  { %v4737_v43 = vld [vmem:[%s6019_s1 + $0x340] sm:$0xff]  }
 0x352   :  { %v2568_v62 = vpop.f32.mrf.mxu1  ;;  %v2647_v53 = vpop.f32.mrf.mxu0 }
 0x353   :  { %v2574_v21 = vadd.f32 %v2568_v62, %v2495_v24  ;;  %v4740_v62 = vld [vmem:[%s6019_s1 + $0x2b8] sm:$0xff]   ;;  %v4750_v24 = vld [vmem:[%s6019_s1 + $0x2e0] sm:$0xff]  }
 0x354   :  { %v4580_v25 = vpop.f32.mrf.mxu1  ;;  %v4592_v30 = vpop.f32.mrf.mxu0 }
 0x355   :  { %v2653_v19 = vadd.f32 %v2647_v53, %v2574_v21  ;;  %v4741_v53 = vld [vmem:[%s6019_s1 + $0x338] sm:$0xff]   ;;  %v4742_v25 = vld [vmem:[%s6019_s1 + $0x2f0] sm:$0xff]   ;;  %v4751_v21 = vld [vmem:[%s6019_s1 + $0x360] sm:$0xff]  }
 0x356   :  { %v2571_v54 = vpop.f32.mrf.mxu1  ;;  %v2650_v20 = vpop.f32.mrf.mxu0  ;;  %v4743_v30 = vld [vmem:[%s6019_s1 + $0x370] sm:$0xff]  }
 0x357   :  { %v4745_v54 = vld [vmem:[%s6019_s1 + $0x330] sm:$0xff]   ;;  %v4746_v20 = vld [vmem:[%s6019_s1 + $0x2e8] sm:$0xff]  }
 0x358   :  { %v4581_v12 = vpop.f32.mrf.mxu1  ;;  %v4593_v59 = vpop.f32.mrf.mxu0 }
 0x359   :  { %v4748_v12 = vld [vmem:[%s6019_s1 + $0x2a8] sm:$0xff]  }
 0x35a   :  { %v4749_v59 = vld [vmem:[%s6019_s1 + $0x328] sm:$0xff]  }
 0x362   :  { %v2726_v60 = vpop.f32.mrf.mxu1 }
 0x363   :  { %v2732_v50 = vadd.f32 %v2726_v60, %v2653_v19  ;;  %v4752_v19 = vld [vmem:[%s6019_s1 + $0x2a0] sm:$0xff]   ;;  %v4754_v60 = vld [vmem:[%s6019_s1 + $0x418] sm:$0xff]  }
 0x364   :  { %v4604_v31 = vpop.f32.mrf.mxu1 }
 0x365   :  { %v2733_v1 = vadd.f32 %v2732_v50, %v2024_v55  ;;  %v4753_v55 = vld [vmem:[%s6019_s1 + $0x320] sm:$0xff]   ;;  %v4755_v50 = vld [vmem:[%s6019_s1 + $0x498] sm:$0xff]   ;;  %v2774_v31 = vlaneseq }
 0x366   :  { %v2729_v7 = vpop.f32.mrf.mxu1 }
 0x367   :  { %v2734_v47 = vmax.f32 %v2733_v1, 0.0  ;;  %v5894_v1 = vshrl.u32 %v2774_v31, 7  ;;  %v4008_v7 = vld [vmem:[%s6021_s3 + $0x3] ss:$8 sm:$0xf0] }
 0x368   :  { %v4605_v29 = vpop.f32.mrf.mxu1  ;;  %v5902_v61 = vor.u32 %v4008_v7, %v4007_v34 }
 0x369   :  { %v2740_v0 = vpack.c.bf16 %v2734_v47, %v2734_v47  ;;  %v2776_v57 = vsub.s32 0, %v5894_v1  ;;  %v2784_v14 = vsub.s32 2, %v5894_v1  ;;  %v2780_v47 = vsub.s32 1, %v5894_v1 }
 0x36a   :  { %v2788_v29 = vsub.s32 3, %v5894_v1 }
 0x36b   :  { %4041 = vmatmul.mubr.msk.bf16.vlgmr.msra.gmra.mxu0 %vm2019_vm8, %v2740_v0  ;;  %4042 = vmatmul.mubr.msk.bf16.vlgmr.msra.gmra.mxu1 %vm2019_vm8, %v2740_v0 }
 0x36c   :  { %3068 = vmatpush1.bf16.msra.mxu0 %v4037_v56  ;;  %3109 = vmatpush1.bf16.msra.mxu1 %v4039_v8  ;;  %v4014_v56 = vcombine.high %v2743_v6, %v2747_v40  ;;  %v4016_v8 = vcombine.high %v2744_v10, %v2748_v3  ;;  %v2789_v44 = vrot.slane %v5902_v61, %v2788_v29  ;;  %v2800_v29 = vsub.s32 6, %v5894_v1 }
 0x36d   :  { %3069 = vmatprep.subr.bf16.mxu0 %v4030_v11  ;;  %3110 = vmatprep.subr.bf16.mxu1 %v4032_v9  ;;  %v2785_v11 = vrot.slane %v5902_v61, %v2784_v14  ;;  %v2781_v9 = vrot.slane %v5902_v61, %v2780_v47  ;;  %v4773_v14 = vld [vmem:[%s6019_s1 + $0x438] sm:$0xff]   ;;  %v2792_v47 = vsub.s32 4, %v5894_v1 }
 0x36e   :  { %3091 = vmatprep.mubr.bf16.mxu0 %v4810_v33  ;;  %3132 = vmatprep.mubr.bf16.mxu1 %v4810_v33  ;;  %v4723_v33 = vld [vmem:[%s6019_s1 + $0x398] sm:$0xff]  }
 0x370   :  { %3070 = vmatpush1.bf16.msra.mxu0 %v4029_v23  ;;  %3111 = vmatpush1.bf16.msra.mxu1 %v4031_v26 }
 0x371   :  { %3071 = vmatprep.subr.bf16.mxu0 %v4022_v15  ;;  %3112 = vmatprep.subr.bf16.mxu1 %v4024_v28 }
 0x374   :  { %3072 = vmatpush1.bf16.msra.mxu0 %v4021_v42  ;;  %3113 = vmatpush1.bf16.msra.mxu1 %v4023_v32 }
 0x375   :  { %3073 = vmatprep.subr.bf16.mxu0 %v4014_v56  ;;  %3114 = vmatprep.subr.bf16.mxu1 %v4016_v8 }
 0x378   :  { %3074 = vmatpush1.bf16.msra.mxu0 %v4013_v46  ;;  %3115 = vmatpush1.bf16.msra.mxu1 %v4015_v41 }
 0x379   :  { %4282 = vmatprep.subr.bf16.mxu0 %v4722_v4  ;;  %4304 = vmatprep.subr.bf16.mxu1 %v4723_v33  ;;  %v4756_v33 = vld [vmem:[%s6019_s1 + $0x3d8] sm:$0xff]  }
 0x37b   :  { %4043 = vmatmul.mubr.msk.bf16.vlgmr.msra.gmra.mxu0 %vm2019_vm8, %v2740_v0  ;;  %4044 = vmatmul.mubr.msk.bf16.vlgmr.msra.gmra.mxu1 %vm2019_vm8, %v2740_v0  ;;  %v2777_v0 = vrot.slane %v5902_v61, %v2776_v57  ;;  %v4772_v57 = vld [vmem:[%s6019_s1 + $0x3b8] sm:$0xff]  }
 0x37c   :  { %4283 = vmatpush3.bf16.msra.mxu0 %v4724_v16  ;;  %4305 = vmatpush3.bf16.msra.mxu1 %v4725_v27  ;;  %v4757_v16 = vld [vmem:[%s6019_s1 + $0x458] sm:$0xff]  }
 0x37d   :  { %4284 = vmatprep.subr.bf16.mxu0 %v4726_v35  ;;  %4306 = vmatprep.subr.bf16.mxu1 %v4727_v39  ;;  %v4758_v39 = vld [vmem:[%s6019_s1 + $0x410] sm:$0xff]  }
 0x380   :  { %4285 = vmatpush3.bf16.msra.mxu0 %v4728_v36  ;;  %4307 = vmatpush3.bf16.msra.mxu1 %v4729_v13  ;;  %v4759_v36 = vld [vmem:[%s6019_s1 + $0x490] sm:$0xff]  }
 0x381   :  { %4286 = vmatprep.subr.bf16.mxu0 %v4730_v2  ;;  %4308 = vmatprep.subr.bf16.mxu1 %v4731_v17  ;;  %v4760_v13 = vld [vmem:[%s6019_s1 + $0x3d0] sm:$0xff]   ;;  %v2796_v17 = vsub.s32 5, %v5894_v1 }
 0x382   :  { %v4761_v2 = vld [vmem:[%s6019_s1 + $0x450] sm:$0xff]  }
 0x384   :  { %4287 = vmatpush3.bf16.msra.mxu0 %v4732_v49  ;;  %4309 = vmatpush3.bf16.msra.mxu1 %v4733_v38  ;;  %v2804_v49 = vsub.s32 7, %v5894_v1  ;;  %v4762_v38 = vld [vmem:[%s6019_s1 + $0x408] sm:$0xff]   ;;  %v4777_v1 = vld [vmem:[%s6019_s1 + $0x430] sm:$0xff]  }
 0x385   :  { %4288 = vmatprep.subr.bf16.mxu0 %v4734_v58  ;;  %4310 = vmatprep.subr.bf16.mxu1 %v4735_v63  ;;  %v4763_v58 = vld [vmem:[%s6019_s1 + $0x488] sm:$0xff]   ;;  %v2797_v63 = vrot.slane %v5902_v61, %v2796_v17 }
 0x388   :  { %4289 = vmatpush3.bf16.msra.mxu0 %v4736_v5  ;;  %4311 = vmatpush3.bf16.msra.mxu1 %v4737_v43  ;;  %v2805_v5 = vrot.slane %v5902_v61, %v2804_v49  ;;  %v4764_v43 = vld [vmem:[%s6019_s1 + $0x3c8] sm:$0xff]  }
 0x389   :  { %4290 = vmatprep.subr.bf16.mxu0 %v4738_v52  ;;  %4312 = vmatprep.subr.bf16.mxu1 %v4739_v22  ;;  %v4765_v52 = vld [vmem:[%s6019_s1 + $0x448] sm:$0xff]  }
 0x38c   :  { %4291 = vmatpush3.bf16.msra.mxu0 %v4740_v62  ;;  %4313 = vmatpush3.bf16.msra.mxu1 %v4741_v53  ;;  %v4766_v53 = vld [vmem:[%s6019_s1 + $0x400] sm:$0xff]  }
 0x38d   :  { %4292 = vmatprep.subr.bf16.mxu0 %v4742_v25  ;;  %4314 = vmatprep.subr.bf16.mxu1 %v4743_v30  ;;  %v4767_v25 = vld [vmem:[%s6019_s1 + $0x480] sm:$0xff]  }
 0x390   :  { %4293 = vmatpush3.bf16.msra.mxu0 %v4744_v48  ;;  %4315 = vmatpush3.bf16.msra.mxu1 %v4745_v54 }
 0x391   :  { %4294 = vmatprep.subr.bf16.mxu0 %v4746_v20  ;;  %4316 = vmatprep.subr.bf16.mxu1 %v4747_v18  ;;  %v4768_v18 = vld [vmem:[%s6019_s1 + $0x3c0] sm:$0xff]  }
 0x394   :  { %4295 = vmatpush3.bf16.msra.mxu0 %v4748_v12  ;;  %4317 = vmatpush3.bf16.msra.mxu1 %v4749_v59  ;;  %v4769_v12 = vld [vmem:[%s6019_s1 + $0x440] sm:$0xff]  }
 0x395   :  { %4296 = vmatprep.subr.bf16.mxu0 %v4750_v24  ;;  %4318 = vmatprep.subr.bf16.mxu1 %v4751_v21  ;;  %v4770_v21 = vld [vmem:[%s6019_s1 + $0x3f8] sm:$0xff]  }
 0x398   :  { %4297 = vmatpush3.bf16.msra.mxu0 %v4752_v19  ;;  %4319 = vmatpush3.bf16.msra.mxu1 %v4753_v55  ;;  %v4771_v19 = vld [vmem:[%s6019_s1 + $0x478] sm:$0xff]  }
 0x399   :  { %4326 = vmatprep.subr.bf16.mxu0 %v4754_v60  ;;  %4348 = vmatprep.subr.bf16.mxu1 %v4755_v50 }
 0x42b   :  { %v3011_v37 = vpop.f32.mrf.mxu0  ;;  %v3052_v45 = vpop.f32.mrf.mxu1 }
 0x42c   :  { %v3012_v51 = vadd.f32 %v3011_v37, %v2777_v0  ;;  %v3053_v23 = vadd.f32 %v3052_v45, %v2785_v11  ;;  %v4774_v0 = vld [vmem:[%s6019_s1 + $0x3f0] sm:$0xff]   ;;  %v2801_v37 = vrot.slane %v5902_v61, %v2800_v29  ;;  %v4778_v45 = vld [vmem:[%s6019_s1 + $0x3e8] sm:$0xff]  }
 0x42d   :  { %v3013_v26 = vpop.f32.mrf.mxu0  ;;  %v3054_v15 = vpop.f32.mrf.mxu1  ;;  %v4775_v11 = vld [vmem:[%s6019_s1 + $0x470] sm:$0xff]  }
 0x42e   :  { %v3014_v28 = vadd.f32 %v3013_v26, %v2781_v9  ;;  %v3055_v6 = vadd.f32 %v3054_v15, %v2789_v44  ;;  %v3141_v40 = vmax.f32 %v3012_v51, 0.0  ;;  %v3143_v10 = vmax.f32 %v3053_v23, 0.0  ;;  %v4776_v9 = vld [vmem:[%s6019_s1 + $0x3b0] sm:$0xff]   ;;  %v4779_v51 = vld [vmem:[%s6019_s1 + $0x468] sm:$0xff]  }
 0x42f   :  { %v3015_v3 = vpop.f32.mrf.mxu0  ;;  %v3056_v42 = vpop.f32.mrf.mxu1  ;;  %v2793_v44 = vrot.slane %v5902_v61, %v2792_v47  ;;  %v4780_v23 = vld [vmem:[%s6019_s1 + $0x3a8] sm:$0xff]  }
 0x430   :  { %v3142_v32 = vmax.f32 %v3014_v28, 0.0  ;;  %v3144_v56 = vmax.f32 %v3055_v6, 0.0  ;;  %v3277_v27 = vpack.c.bf16 %v3141_v40, %v3141_v40  ;;  %v3279_v35 = vpack.c.bf16 %v3143_v10, %v3143_v10  ;;  %v4781_v61 = vld [vmem:[%s6019_s1 + $0x428] sm:$0xff]   ;;  %v4782_v28 = vld [vmem:[%s6019_s1 + $0x3e0] sm:$0xff]  }
 0x431   :  { %v3016_v8 = vpop.f32.mrf.mxu0  ;;  %v3057_v46 = vpop.f32.mrf.mxu1  ;;  %v4783_v6 = vld [vmem:[%s6019_s1 + $0x460] sm:$0xff]  }
 0x432   :  { %v3278_v41 = vpack.c.bf16 %v3142_v32, %v3142_v32  ;;  %v3280_v4 = vpack.c.bf16 %v3144_v56, %v3144_v56  ;;  %v4784_v40 = vld [vmem:[%s6019_s1 + $0x3a0] sm:$0xff]   ;;  %v4811_v8 = vmov 6  }
 0x433   :  { %v4785_v10 = vld [vmem:[%s6019_s1 + $0x420] sm:$0xff]   ;;  %4613 = vset.pattern.permute.xlu0 %v4811_v8 }
 0x434   :  { %3701 = vmatprep.mubr.bf16.mxu0 %v3278_v41  ;;  %3741 = vmatprep.mubr.bf16.mxu1 %v3280_v4 }
 0x435   :  { %3702 = vmatmul.mubr.bf16.vlgmr.msra.gmra.mxu0 %v3277_v27  ;;  %3742 = vmatmul.mubr.bf16.vlgmr.msra.gmra.mxu1 %v3279_v35 }
 0x436   :  { %4327 = vmatpush3.bf16.msra.mxu0 %v4756_v33  ;;  %4349 = vmatpush3.bf16.msra.mxu1 %v4757_v16 }
 0x437   :  { %4328 = vmatprep.subr.bf16.mxu0 %v4758_v39  ;;  %4350 = vmatprep.subr.bf16.mxu1 %v4759_v36 }
 0x43a   :  { %4329 = vmatpush3.bf16.msra.mxu0 %v4760_v13  ;;  %4351 = vmatpush3.bf16.msra.mxu1 %v4761_v2  ;;  %v2739_v13 = vld [vmem:[%s6021_s3 + $0x4] ss:$0 sm:$0xff] }
 0x43b   :  { %v3093_v22 = vpop.f32.mrf.mxu0  ;;  %v3134_v62 = vpop.f32.mrf.mxu1  ;;  %4330 = vmatprep.subr.bf16.mxu0 %v4762_v38  ;;  %4352 = vmatprep.subr.bf16.mxu1 %v4763_v58 }
 0x43c   :  { %v3094_v26 = vadd.f32 %v3093_v22, %v2793_v44  ;;  %v3135_v15 = vadd.f32 %v3134_v62, %v2801_v37 }
 0x43d   :  { %v3095_v30 = vpop.f32.mrf.mxu0  ;;  %v3136_v48 = vpop.f32.mrf.mxu1 }
 0x43e   :  { %v3096_v54 = vadd.f32 %v3095_v30, %v2797_v63  ;;  %v3137_v20 = vadd.f32 %v3136_v48, %v2805_v5  ;;  %4331 = vmatpush3.bf16.msra.mxu0 %v4764_v43  ;;  %4353 = vmatpush3.bf16.msra.mxu1 %v4765_v52  ;;  %v3145_v3 = vmax.f32 %v3094_v26, 0.0  ;;  %v3147_v42 = vmax.f32 %v3135_v15, 0.0 }
 0x43f   :  { %v3097_v59 = vpop.f32.mrf.mxu0  ;;  %v3138_v24 = vpop.f32.mrf.mxu1  ;;  %4332 = vmatprep.subr.bf16.mxu0 %v4766_v53  ;;  %4354 = vmatprep.subr.bf16.mxu1 %v4767_v25 }
 0x440   :  { %v3146_v55 = vmax.f32 %v3096_v54, 0.0  ;;  %v3148_v60 = vmax.f32 %v3137_v20, 0.0  ;;  %v3281_v32 = vpack.c.bf16 %v3145_v3, %v3145_v3  ;;  %v3283_v56 = vpack.c.bf16 %v3147_v42, %v3147_v42 }
 0x441   :  { %v3098_v50 = vpop.f32.mrf.mxu0  ;;  %v3139_v31 = vpop.f32.mrf.mxu1 }
 0x442   :  { %v3282_v34 = vpack.c.bf16 %v3146_v55, %v3146_v55  ;;  %v3284_v7 = vpack.c.bf16 %v3148_v60, %v3148_v60  ;;  %4333 = vmatpush3.bf16.msra.mxu0 %v4768_v18  ;;  %4355 = vmatpush3.bf16.msra.mxu1 %v4769_v12 }
 0x443   :  { %4334 = vmatprep.subr.bf16.mxu0 %v4770_v21  ;;  %4356 = vmatprep.subr.bf16.mxu1 %v4771_v19 }
 0x444   :  { %3781 = vmatprep.mubr.bf16.mxu0 %v3282_v34  ;;  %3821 = vmatprep.mubr.bf16.mxu1 %v3284_v7 }
 0x446   :  { %4335 = vmatpush3.bf16.msra.mxu0 %v4772_v57  ;;  %4357 = vmatpush3.bf16.msra.mxu1 %v4773_v14 }
 0x447   :  { %4336 = vmatprep.subr.bf16.mxu0 %v4774_v0  ;;  %4358 = vmatprep.subr.bf16.mxu1 %v4775_v11 }
 0x44a   :  { %4337 = vmatpush3.bf16.msra.mxu0 %v4776_v9  ;;  %4359 = vmatpush3.bf16.msra.mxu1 %v4777_v1 }
 0x44b   :  { %4338 = vmatprep.subr.bf16.mxu0 %v4778_v45  ;;  %4360 = vmatprep.subr.bf16.mxu1 %v4779_v51 }
 0x44e   :  { %4339 = vmatpush3.bf16.msra.mxu0 %v4780_v23  ;;  %4361 = vmatpush3.bf16.msra.mxu1 %v4781_v61 }
 0x44f   :  { %4340 = vmatprep.subr.bf16.mxu0 %v4782_v28  ;;  %4362 = vmatprep.subr.bf16.mxu1 %v4783_v6 }
 0x452   :  { %4341 = vmatpush3.bf16.msra.mxu0 %v4784_v40  ;;  %4363 = vmatpush3.bf16.msra.mxu1 %v4785_v10 }
 0x455   :  { %3782 = vmatmul.mubr.bf16.vlgmr.msra.gmra.mxu0 %v3281_v32  ;;  %3822 = vmatmul.mubr.bf16.vlgmr.msra.gmra.mxu1 %v3283_v56 }
 0x4f5   :  { %v4298_v46 = vpop.f32.mrf.mxu0  ;;  %v4320_v41 = vpop.f32.mrf.mxu1 }
 0x4f7   :  { %v4299_v4 = vpop.f32.mrf.mxu0  ;;  %v4321_v33 = vpop.f32.mrf.mxu1 }
 0x4f8   :  { %v4300_v36 = vadd.f32 %v4299_v4, %v4298_v46  ;;  %v4322_v38 = vadd.f32 %v4321_v33, %v4320_v41 }
 0x4f9   :  { %v4301_v16 = vpop.f32.mrf.mxu0  ;;  %v4323_v27 = vpop.f32.mrf.mxu1 }
 0x4fa   :  { %v3704_v2 = vadd.f32 %v4300_v36, %v2739_v13 }
 0x4fb   :  { %v4302_v35 = vpop.f32.mrf.mxu0  ;;  %v4324_v39 = vpop.f32.mrf.mxu1 }
 0x4fc   :  { %v3744_v5 = vadd.f32 %v4322_v38, %v3704_v2 }
 0x515   :  { %v4342_v17 = vpop.f32.mrf.mxu0  ;;  %v4364_v49 = vpop.f32.mrf.mxu1 }
 0x517   :  { %v4343_v58 = vpop.f32.mrf.mxu0  ;;  %v4365_v63 = vpop.f32.mrf.mxu1 }
 0x518   :  { %v4344_v43 = vadd.f32 %v4343_v58, %v4342_v17  ;;  %v4366_v53 = vadd.f32 %v4365_v63, %v4364_v49 }
 0x519   :  { %v4345_v52 = vpop.f32.mrf.mxu0  ;;  %v4367_v22 = vpop.f32.mrf.mxu1 }
 0x51a   :  { %v3784_v62 = vadd.f32 %v4344_v43, %v3744_v5 }
 0x51b   :  { %v4346_v25 = vpop.f32.mrf.mxu0  ;;  %v4368_v30 = vpop.f32.mrf.mxu1 }
 0x51c   :  { %v3824_v48 = vadd.f32 %v4366_v53, %v3784_v62 }
 0x51e   :  { %v3836_v54 = vsel %vm3835_vm9, %v3824_v48, 0.0 }
 0x51f   :  { %3837 = vadd.xlane.f32.xlu0 %v3836_v54 }
 0x535   :  { %3831 = vperm.xlu0 %4613, %v3824_v48  }
 0x5a8   :  { %v3838_v20 = vpop.xlane.xlu0 %3837 }
 0x5a9   :  { %v3839_v18 = vrot.slane %v3838_v20, 4 }
 0x5ab   :  { %v3840_v12 = vadd.f32 %v3839_v18, %v3838_v20 }
 0x5ad   :  { %v3841_v59 = vrot.slane %v3840_v12, 2 }
 0x5af   :  { %v3842_v24 = vadd.f32 %v3841_v59, %v3840_v12 }
 0x5b0   :  { %v3832_v55 = vpop.permute.xlu0 %3831 }
 0x5b1   :  { %v3843_v21 = vrot.slane %v3842_v24, 1  ;;  %v3834_v60 = vadd.f32 %v3832_v55, %v3824_v48 }
 0x5b3   :  { %v3844_v19 = vadd.f32 %v3843_v21, %v3842_v24 }
 0x5b5   :  { %4606 = vpush %v3844_v19 }
 0x5e6   :  { %s4607_s3 = spop %4606 }
 0x5e7   :  { %s3848_s10 = smul.f32 0.083333336, %s4607_s3 }
 0x5e9   :  { %v3849_v50 = vstv %s3848_s10 }
 0x5ea   :  { %v3850_v31 = vsub.f32 %v3834_v60, %v3849_v50 }
 0x5ec   :  { %3851 = vst.msk [vmem:[#allocation4] sm:$0x3] %vm3835_vm9, %v3850_v31 }
 0x5ed   :  { %4797 = shalt.err (!%p4794_p4)
}
 0x5ee   :  { %3861 = dma.vmem_to_hbm [thread:$0]  %s3859_s12, 32, %s6022_s4, [#allocation5]  }
 0x5ef   :  { %4806 = dma.done.wait [#allocation5], 32  }
 0x5f0   :  { %4807 = vsyncadd [#allocation5], 4294967264 }
 0x5f1   :  { %3865 = vsyncpa [#allocation5], 1 }

</bundles_post_ra>
